<compile_context>
chip_gen: v7x
topology: tpu7x:2x2x1
jax: 0.10.0
libtpu: 0.0.40
codegen_flags: <defaults>
</compile_context>

<pallas_src>
import jax
import jax.numpy as jnp
from jax.experimental import pallas as pl
from jax.experimental.pallas import tpu as pltpu


def _make_cnn_lstm_kernel(T, Bp, H):
    """Build the fused Conv1d+ReLU+MaxPool+2-layer-LSTM+Linear kernel body."""
    Tm = T - 1  # MaxPool1d(kernel_size=2, stride=1) output length

    def sigmoid(z):
        # logistic(z) == 0.5*tanh(0.5*z)+0.5 : single EUP tanh, no exp overflow
        return 0.5 * jnp.tanh(0.5 * z) + 0.5

    def kernel(xw_ref, wc_ref, bc_ref,
               wi0_ref, wh0_ref, b0_ref,
               wcat1_ref, b1_ref,
               wf_ref, bf_ref,
               out_ref):
        # --- Conv1d(D->H, kernel=3, padding=1) as one (T*Bp,3D)@(3D,H) matmul ---
        y = jnp.dot(xw_ref[...], wc_ref[...], preferred_element_type=jnp.float32)
        y = jnp.maximum(y + bc_ref[...], 0.0).reshape(T, Bp, H)

        # --- MaxPool1d(kernel_size=2, stride=1) over time ---
        p = jnp.maximum(y[:Tm], y[1:])                        # (Tm, Bp, H)

        # --- Layer-0 input projection for ALL timesteps in one big matmul ---
        xg0 = (jnp.dot(p.reshape(Tm * Bp, H), wi0_ref[...],
                       preferred_element_type=jnp.float32)
               + b0_ref[...]).reshape(Tm, Bp, 4 * H)

        # --- Hoisted weights / pre-broadcast bias for the serial recurrence ---
        wh0 = wh0_ref[...]                                    # (H, 4H)
        wcat1 = wcat1_ref[...]                                # (2H, 4H) = [wi1; wh1]
        b1b = jnp.broadcast_to(b1_ref[...], (Bp, 4 * H))

        h0 = jnp.zeros((Bp, H), jnp.float32)
        c0 = jnp.zeros((Bp, H), jnp.float32)
        h1 = jnp.zeros((Bp, H), jnp.float32)
        c1 = jnp.zeros((Bp, H), jnp.float32)

        # --- 2-layer LSTM recurrence, statically unrolled (PyTorch gate order i,f,g,o) ---
        for t in range(Tm):
            # layer 0: only the recurrent dot is on the serial chain
            g0 = xg0[t] + jnp.dot(h0, wh0, preferred_element_type=jnp.float32)
            s0 = sigmoid(g0)                  # one pass over the full (Bp, 4H) vreg
            t0 = jnp.tanh(g0)
            c0 = s0[:, H:2 * H] * c0 + s0[:, :H] * t0[:, 2 * H:3 * H]
            h0 = s0[:, 3 * H:] * jnp.tanh(c0)

            # layer 1: fused input+recurrent dot, contraction K = 2H
            hcat = jnp.concatenate([h0, h1], axis=-1)         # (Bp, 2H)
            g1 = jnp.dot(hcat, wcat1, preferred_element_type=jnp.float32) + b1b
            s1 = sigmoid(g1)
            t1 = jnp.tanh(g1)
            c1 = s1[:, H:2 * H] * c1 + s1[:, :H] * t1[:, 2 * H:3 * H]
            h1 = s1[:, 3 * H:] * jnp.tanh(c1)

        # --- Dropout is identity at inference; Linear(H -> O), lane-padded to 128 ---
        # TODO(synk): training-mode dropout (LSTM inter-layer + fc-input) not implemented.
        out_ref[...] = (jnp.dot(h1, wf_ref[...], preferred_element_type=jnp.float32)
                        + bf_ref[...])

    return kernel


def cnn_lstm_forward(x, params):
    """x: (B, T, D_in) float32, matching torch's [batch, seq_len, input_dim]."""
    wc, bc, wi0, wh0, b0, wi1, wh1, b1, wf, bf = params
    B, T, D = x.shape
    H = wc.shape[1]
    O = wf.shape[1]

    # Pad batch to sublane granularity (8): fills vregs / MXU rows and makes the
    # in-kernel (T, Bp, H) <-> (T*Bp, H) reshapes free views.
    Bp = max(8, ((B + 7) // 8) * 8)
    OP = 128  # lane-dense padded output width (avoids masked vst on O=1)

    # Glue: batch-pad, time-major, zero-pad + im2col for kernel_size=3, padding=1.
    xb = jnp.pad(x, ((0, Bp - B), (0, 0), (0, 0)))               # (Bp, T, D)
    xt = jnp.transpose(xb, (1, 0, 2))                            # (T, Bp, D)
    xp = jnp.pad(xt, ((1, 1), (0, 0), (0, 0)))                   # (T+2, Bp, D)
    xw = jnp.concatenate([xp[k:k + T] for k in range(3)], axis=-1)  # (T, Bp, 3D)
    xw = xw.reshape(T * Bp, 3 * D)

    wcat1 = jnp.concatenate([wi1, wh1], axis=0)                  # (2H, 4H)
    wfp = jnp.pad(wf, ((0, 0), (0, OP - O)))                     # (H, 128)
    bfp = jnp.pad(bf, ((0, 0), (0, OP - O)))                     # (1, 128)

    kernel = _make_cnn_lstm_kernel(T, Bp, H)
    out = pl.pallas_call(
        kernel,
        out_shape=jax.ShapeDtypeStruct((Bp, OP), jnp.float32),
        in_specs=[pl.BlockSpec(memory_space=pltpu.MemorySpace.VMEM)] * 10,
        out_specs=pl.BlockSpec(memory_space=pltpu.MemorySpace.VMEM),
    )(xw, wc, bc, wi0, wh0, b0, wcat1, b1, wfp, bfp)
    return out[:B, :O]


def reference_forward(x, params):
    """Pure-JAX reference of the same math (sanity check)."""
    wc, bc, wi0, wh0, b0, wi1, wh1, b1, wf, bf = params
    B, T, D = x.shape
    H = wc.shape[1]
    xt = jnp.transpose(x, (1, 0, 2))
    xp = jnp.pad(xt, ((1, 1), (0, 0), (0, 0)))
    xw = jnp.concatenate([xp[k:k + T] for k in range(3)], axis=-1)
    y = jnp.maximum(jnp.einsum('tbk,kh->tbh', xw, wc) + bc, 0.0)
    p = jnp.maximum(y[:T - 1], y[1:])

    def sig(z):
        return 1.0 / (1.0 + jnp.exp(-z))

    def cell(xt_, h, c, wi, wh, b):
        g = xt_ @ wi + h @ wh + b
        i = sig(g[:, :H]); f = sig(g[:, H:2 * H])
        gg = jnp.tanh(g[:, 2 * H:3 * H]); o = sig(g[:, 3 * H:])
        c = f * c + i * gg
        return o * jnp.tanh(c), c

    h0 = c0 = h1 = c1 = jnp.zeros((B, H), jnp.float32)
    for t in range(T - 1):
        h0, c0 = cell(p[t], h0, c0, wi0, wh0, b0)
        h1, c1 = cell(h0, h1, c1, wi1, wh1, b1)
    return h1 @ wf + bf


if __name__ == "__main__":
    # Small shapes consistent with the module: input_dim=4, hidden_dim=32,
    # num_layers=2, output_dim=1, kernel_size=3, batch=2, seq_len=8.
    B, T, D, H, O = 2, 8, 4, 32, 1

    key = jax.random.PRNGKey(0)
    keys = jax.random.split(key, 12)

    def u(k, shape, fan):
        bound = 1.0 / jnp.sqrt(jnp.float32(fan))
        return jax.random.uniform(k, shape, jnp.float32, -bound, bound)

    # Conv1d weight (H, D, 3)  ->  flattened (3*D, H) with Wc[k*D+c, h] = W[h, c, k]
    w_conv = u(keys[0], (H, D, 3), D * 3)
    wc = jnp.transpose(w_conv, (2, 1, 0)).reshape(3 * D, H)
    bc = u(keys[1], (1, H), D * 3)
    # LSTM layer 0 (input size H): weights stored transposed, biases fused (b_ih+b_hh)
    wi0 = u(keys[2], (H, 4 * H), H)
    wh0 = u(keys[3], (H, 4 * H), H)
    b0 = u(keys[4], (1, 4 * H), H) + u(keys[5], (1, 4 * H), H)
    # LSTM layer 1
    wi1 = u(keys[6], (H, 4 * H), H)
    wh1 = u(keys[7], (H, 4 * H), H)
    b1 = u(keys[8], (1, 4 * H), H) + u(keys[9], (1, 4 * H), H)
    # Final Linear(H, O)
    wf = u(keys[10], (H, O), H)
    bf = u(keys[11], (1, O), H)

    params = (wc, bc, wi0, wh0, b0, wi1, wh1, b1, wf, bf)

    x = jax.random.normal(jax.random.PRNGKey(1), (B, T, D), jnp.float32)

    out = cnn_lstm_forward(x, params)
    jax.block_until_ready(out)

    ref = reference_forward(x, params)
    assert out.shape == (B, O), out.shape
    assert jnp.allclose(out, ref, atol=1e-3, rtol=1e-3), (out, ref)

    print("KERNEL_OK")
</pallas_src>

<mosaic_0001>
module attributes {stable_mosaic.version = 11 : i64} {
  func.func @kernel(%arg0: memref<64x12xf32, #tpu.memory_space<vmem>>, %arg1: memref<12x32xf32, #tpu.memory_space<vmem>>, %arg2: memref<1x32xf32, #tpu.memory_space<vmem>>, %arg3: memref<32x128xf32, #tpu.memory_space<vmem>>, %arg4: memref<32x128xf32, #tpu.memory_space<vmem>>, %arg5: memref<1x128xf32, #tpu.memory_space<vmem>>, %arg6: memref<64x128xf32, #tpu.memory_space<vmem>>, %arg7: memref<1x128xf32, #tpu.memory_space<vmem>>, %arg8: memref<32x128xf32, #tpu.memory_space<vmem>>, %arg9: memref<1x128xf32, #tpu.memory_space<vmem>>, %arg10: memref<8x128xf32, #tpu.memory_space<vmem>>) attributes {dimension_semantics = [], scalar_prefetch = 0 : i64, scratch_operands = 0 : i64, tpu.core_type = #tpu.core_type<tc>} {
    %c0 = arith.constant 0 : index
    %c0_0 = arith.constant 0 : index
    %0 = vector.load %arg0[%c0, %c0_0] : memref<64x12xf32, #tpu.memory_space<vmem>>, vector<64x12xf32>
    %c0_1 = arith.constant 0 : index
    %c0_2 = arith.constant 0 : index
    %1 = vector.load %arg1[%c0_1, %c0_2] : memref<12x32xf32, #tpu.memory_space<vmem>>, vector<12x32xf32>
    %cst = arith.constant dense<0.000000e+00> : vector<64x32xf32>
    %2 = tpu.matmul %0, %1, %cst {dimension_numbers = #tpu.dot_dimension_numbers<[1], [0], [0], [1], [0, 0, 1, 1], [], []>} : vector<64x12xf32>, vector<12x32xf32>, vector<64x32xf32> -> vector<64x32xf32>
    %c0_3 = arith.constant 0 : index
    %c0_4 = arith.constant 0 : index
    %3 = vector.load %arg2[%c0_3, %c0_4] : memref<1x32xf32, #tpu.memory_space<vmem>>, vector<1x32xf32>
    %4 = vector.broadcast %3 : vector<1x32xf32> to vector<64x32xf32>
    %5 = arith.addf %2, %4 : vector<64x32xf32>
    %cst_5 = arith.constant 0.000000e+00 : f32
    %6 = vector.broadcast %cst_5 : f32 to vector<64x32xf32>
    %7 = arith.maximumf %5, %6 : vector<64x32xf32>
    %8 = vector.shape_cast %7 : vector<64x32xf32> to vector<8x8x32xf32>
    %9 = vector.extract_strided_slice %8 {offsets = [0, 0, 0], sizes = [7, 8, 32], strides = [1, 1, 1]} : vector<8x8x32xf32> to vector<7x8x32xf32>
    %10 = vector.extract_strided_slice %8 {offsets = [1, 0, 0], sizes = [7, 8, 32], strides = [1, 1, 1]} : vector<8x8x32xf32> to vector<7x8x32xf32>
    %11 = arith.maximumf %9, %10 : vector<7x8x32xf32>
    %12 = vector.shape_cast %11 : vector<7x8x32xf32> to vector<56x32xf32>
    %c0_6 = arith.constant 0 : index
    %c0_7 = arith.constant 0 : index
    %13 = vector.load %arg3[%c0_6, %c0_7] : memref<32x128xf32, #tpu.memory_space<vmem>>, vector<32x128xf32>
    %cst_8 = arith.constant dense<0.000000e+00> : vector<56x128xf32>
    %14 = tpu.matmul %12, %13, %cst_8 {dimension_numbers = #tpu.dot_dimension_numbers<[1], [0], [0], [1], [0, 0, 1, 1], [], []>} : vector<56x32xf32>, vector<32x128xf32>, vector<56x128xf32> -> vector<56x128xf32>
    %c0_9 = arith.constant 0 : index
    %c0_10 = arith.constant 0 : index
    %15 = vector.load %arg5[%c0_9, %c0_10] : memref<1x128xf32, #tpu.memory_space<vmem>>, vector<1x128xf32>
    %16 = vector.broadcast %15 : vector<1x128xf32> to vector<56x128xf32>
    %17 = arith.addf %14, %16 : vector<56x128xf32>
    %18 = vector.shape_cast %17 : vector<56x128xf32> to vector<7x8x128xf32>
    %c0_11 = arith.constant 0 : index
    %c0_12 = arith.constant 0 : index
    %19 = vector.load %arg4[%c0_11, %c0_12] : memref<32x128xf32, #tpu.memory_space<vmem>>, vector<32x128xf32>
    %c0_13 = arith.constant 0 : index
    %c0_14 = arith.constant 0 : index
    %20 = vector.load %arg6[%c0_13, %c0_14] : memref<64x128xf32, #tpu.memory_space<vmem>>, vector<64x128xf32>
    %c0_15 = arith.constant 0 : index
    %c0_16 = arith.constant 0 : index
    %21 = vector.load %arg7[%c0_15, %c0_16] : memref<1x128xf32, #tpu.memory_space<vmem>>, vector<1x128xf32>
    %22 = vector.shape_cast %21 : vector<1x128xf32> to vector<1x128xf32>
    %23 = vector.broadcast %22 : vector<1x128xf32> to vector<8x128xf32>
    %cst_17 = arith.constant 0.000000e+00 : f32
    %24 = vector.broadcast %cst_17 : f32 to vector<8x32xf32>
    %cst_18 = arith.constant 0.000000e+00 : f32
    %25 = vector.broadcast %cst_18 : f32 to vector<8x32xf32>
    %cst_19 = arith.constant 0.000000e+00 : f32
    %26 = vector.broadcast %cst_19 : f32 to vector<8x32xf32>
    %cst_20 = arith.constant 0.000000e+00 : f32
    %27 = vector.broadcast %cst_20 : f32 to vector<8x32xf32>
    %28 = vector.extract_strided_slice %18 {offsets = [0, 0, 0], sizes = [1, 8, 128], strides = [1, 1, 1]} : vector<7x8x128xf32> to vector<1x8x128xf32>
    %29 = vector.shape_cast %28 : vector<1x8x128xf32> to vector<8x128xf32>
    %cst_21 = arith.constant dense<0.000000e+00> : vector<8x128xf32>
    %30 = tpu.matmul %24, %19, %cst_21 {dimension_numbers = #tpu.dot_dimension_numbers<[1], [0], [0], [1], [0, 0, 1, 1], [], []>} : vector<8x32xf32>, vector<32x128xf32>, vector<8x128xf32> -> vector<8x128xf32>
    %31 = arith.addf %29, %30 : vector<8x128xf32>
    %cst_22 = arith.constant 5.000000e-01 : f32
    %32 = vector.broadcast %cst_22 : f32 to vector<8x128xf32>
    %33 = arith.mulf %32, %31 : vector<8x128xf32>
    %34 = math.tanh %33 : vector<8x128xf32>
    %cst_23 = arith.constant 5.000000e-01 : f32
    %35 = vector.broadcast %cst_23 : f32 to vector<8x128xf32>
    %36 = arith.mulf %35, %34 : vector<8x128xf32>
    %cst_24 = arith.constant 5.000000e-01 : f32
    %37 = vector.broadcast %cst_24 : f32 to vector<8x128xf32>
    %38 = arith.addf %36, %37 : vector<8x128xf32>
    %39 = math.tanh %31 : vector<8x128xf32>
    %40 = vector.extract_strided_slice %38 {offsets = [0, 32], sizes = [8, 32], strides = [1, 1]} : vector<8x128xf32> to vector<8x32xf32>
    %41 = arith.mulf %40, %25 : vector<8x32xf32>
    %42 = vector.extract_strided_slice %38 {offsets = [0, 0], sizes = [8, 32], strides = [1, 1]} : vector<8x128xf32> to vector<8x32xf32>
    %43 = vector.extract_strided_slice %39 {offsets = [0, 64], sizes = [8, 32], strides = [1, 1]} : vector<8x128xf32> to vector<8x32xf32>
    %44 = arith.mulf %42, %43 : vector<8x32xf32>
    %45 = arith.addf %41, %44 : vector<8x32xf32>
    %46 = vector.extract_strided_slice %38 {offsets = [0, 96], sizes = [8, 32], strides = [1, 1]} : vector<8x128xf32> to vector<8x32xf32>
    %47 = math.tanh %45 : vector<8x32xf32>
    %48 = arith.mulf %46, %47 : vector<8x32xf32>
    %49 = tpu.concatenate %48, %26 in 1 : vector<8x32xf32>, vector<8x32xf32> -> vector<8x64xf32>
    %cst_25 = arith.constant dense<0.000000e+00> : vector<8x128xf32>
    %50 = tpu.matmul %49, %20, %cst_25 {dimension_numbers = #tpu.dot_dimension_numbers<[1], [0], [0], [1], [0, 0, 1, 1], [], []>} : vector<8x64xf32>, vector<64x128xf32>, vector<8x128xf32> -> vector<8x128xf32>
    %51 = arith.addf %50, %23 : vector<8x128xf32>
    %cst_26 = arith.constant 5.000000e-01 : f32
    %52 = vector.broadcast %cst_26 : f32 to vector<8x128xf32>
    %53 = arith.mulf %52, %51 : vector<8x128xf32>
    %54 = math.tanh %53 : vector<8x128xf32>
    %cst_27 = arith.constant 5.000000e-01 : f32
    %55 = vector.broadcast %cst_27 : f32 to vector<8x128xf32>
    %56 = arith.mulf %55, %54 : vector<8x128xf32>
    %cst_28 = arith.constant 5.000000e-01 : f32
    %57 = vector.broadcast %cst_28 : f32 to vector<8x128xf32>
    %58 = arith.addf %56, %57 : vector<8x128xf32>
    %59 = math.tanh %51 : vector<8x128xf32>
    %60 = vector.extract_strided_slice %58 {offsets = [0, 32], sizes = [8, 32], strides = [1, 1]} : vector<8x128xf32> to vector<8x32xf32>
    %61 = arith.mulf %60, %27 : vector<8x32xf32>
    %62 = vector.extract_strided_slice %58 {offsets = [0, 0], sizes = [8, 32], strides = [1, 1]} : vector<8x128xf32> to vector<8x32xf32>
    %63 = vector.extract_strided_slice %59 {offsets = [0, 64], sizes = [8, 32], strides = [1, 1]} : vector<8x128xf32> to vector<8x32xf32>
    %64 = arith.mulf %62, %63 : vector<8x32xf32>
    %65 = arith.addf %61, %64 : vector<8x32xf32>
    %66 = vector.extract_strided_slice %58 {offsets = [0, 96], sizes = [8, 32], strides = [1, 1]} : vector<8x128xf32> to vector<8x32xf32>
    %67 = math.tanh %65 : vector<8x32xf32>
    %68 = arith.mulf %66, %67 : vector<8x32xf32>
    %69 = vector.extract_strided_slice %18 {offsets = [1, 0, 0], sizes = [1, 8, 128], strides = [1, 1, 1]} : vector<7x8x128xf32> to vector<1x8x128xf32>
    %70 = vector.shape_cast %69 : vector<1x8x128xf32> to vector<8x128xf32>
    %cst_29 = arith.constant dense<0.000000e+00> : vector<8x128xf32>
    %71 = tpu.matmul %48, %19, %cst_29 {dimension_numbers = #tpu.dot_dimension_numbers<[1], [0], [0], [1], [0, 0, 1, 1], [], []>} : vector<8x32xf32>, vector<32x128xf32>, vector<8x128xf32> -> vector<8x128xf32>
    %72 = arith.addf %70, %71 : vector<8x128xf32>
    %cst_30 = arith.constant 5.000000e-01 : f32
    %73 = vector.broadcast %cst_30 : f32 to vector<8x128xf32>
    %74 = arith.mulf %73, %72 : vector<8x128xf32>
    %75 = math.tanh %74 : vector<8x128xf32>
    %cst_31 = arith.constant 5.000000e-01 : f32
    %76 = vector.broadcast %cst_31 : f32 to vector<8x128xf32>
    %77 = arith.mulf %76, %75 : vector<8x128xf32>
    %cst_32 = arith.constant 5.000000e-01 : f32
    %78 = vector.broadcast %cst_32 : f32 to vector<8x128xf32>
    %79 = arith.addf %77, %78 : vector<8x128xf32>
    %80 = math.tanh %72 : vector<8x128xf32>
    %81 = vector.extract_strided_slice %79 {offsets = [0, 32], sizes = [8, 32], strides = [1, 1]} : vector<8x128xf32> to vector<8x32xf32>
    %82 = arith.mulf %81, %45 : vector<8x32xf32>
    %83 = vector.extract_strided_slice %79 {offsets = [0, 0], sizes = [8, 32], strides = [1, 1]} : vector<8x128xf32> to vector<8x32xf32>
    %84 = vector.extract_strided_slice %80 {offsets = [0, 64], sizes = [8, 32], strides = [1, 1]} : vector<8x128xf32> to vector<8x32xf32>
    %85 = arith.mulf %83, %84 : vector<8x32xf32>
    %86 = arith.addf %82, %85 : vector<8x32xf32>
    %87 = vector.extract_strided_slice %79 {offsets = [0, 96], sizes = [8, 32], strides = [1, 1]} : vector<8x128xf32> to vector<8x32xf32>
    %88 = math.tanh %86 : vector<8x32xf32>
    %89 = arith.mulf %87, %88 : vector<8x32xf32>
    %90 = tpu.concatenate %89, %68 in 1 : vector<8x32xf32>, vector<8x32xf32> -> vector<8x64xf32>
    %cst_33 = arith.constant dense<0.000000e+00> : vector<8x128xf32>
    %91 = tpu.matmul %90, %20, %cst_33 {dimension_numbers = #tpu.dot_dimension_numbers<[1], [0], [0], [1], [0, 0, 1, 1], [], []>} : vector<8x64xf32>, vector<64x128xf32>, vector<8x128xf32> -> vector<8x128xf32>
    %92 = arith.addf %91, %23 : vector<8x128xf32>
    %cst_34 = arith.constant 5.000000e-01 : f32
    %93 = vector.broadcast %cst_34 : f32 to vector<8x128xf32>
    %94 = arith.mulf %93, %92 : vector<8x128xf32>
    %95 = math.tanh %94 : vector<8x128xf32>
    %cst_35 = arith.constant 5.000000e-01 : f32
    %96 = vector.broadcast %cst_35 : f32 to vector<8x128xf32>
    %97 = arith.mulf %96, %95 : vector<8x128xf32>
    %cst_36 = arith.constant 5.000000e-01 : f32
    %98 = vector.broadcast %cst_36 : f32 to vector<8x128xf32>
    %99 = arith.addf %97, %98 : vector<8x128xf32>
    %100 = math.tanh %92 : vector<8x128xf32>
    %101 = vector.extract_strided_slice %99 {offsets = [0, 32], sizes = [8, 32], strides = [1, 1]} : vector<8x128xf32> to vector<8x32xf32>
    %102 = arith.mulf %101, %65 : vector<8x32xf32>
    %103 = vector.extract_strided_slice %99 {offsets = [0, 0], sizes = [8, 32], strides = [1, 1]} : vector<8x128xf32> to vector<8x32xf32>
    %104 = vector.extract_strided_slice %100 {offsets = [0, 64], sizes = [8, 32], strides = [1, 1]} : vector<8x128xf32> to vector<8x32xf32>
    %105 = arith.mulf %103, %104 : vector<8x32xf32>
    %106 = arith.addf %102, %105 : vector<8x32xf32>
    %107 = vector.extract_strided_slice %99 {offsets = [0, 96], sizes = [8, 32], strides = [1, 1]} : vector<8x128xf32> to vector<8x32xf32>
    %108 = math.tanh %106 : vector<8x32xf32>
    %109 = arith.mulf %107, %108 : vector<8x32xf32>
    %110 = vector.extract_strided_slice %18 {offsets = [2, 0, 0], sizes = [1, 8, 128], strides = [1, 1, 1]} : vector<7x8x128xf32> to vector<1x8x128xf32>
    %111 = vector.shape_cast %110 : vector<1x8x128xf32> to vector<8x128xf32>
    %cst_37 = arith.constant dense<0.000000e+00> : vector<8x128xf32>
    %112 = tpu.matmul %89, %19, %cst_37 {dimension_numbers = #tpu.dot_dimension_numbers<[1], [0], [0], [1], [0, 0, 1, 1], [], []>} : vector<8x32xf32>, vector<32x128xf32>, vector<8x128xf32> -> vector<8x128xf32>
    %113 = arith.addf %111, %112 : vector<8x128xf32>
    %cst_38 = arith.constant 5.000000e-01 : f32
    %114 = vector.broadcast %cst_38 : f32 to vector<8x128xf32>
    %115 = arith.mulf %114, %113 : vector<8x128xf32>
    %116 = math.tanh %115 : vector<8x128xf32>
    %cst_39 = arith.constant 5.000000e-01 : f32
    %117 = vector.broadcast %cst_39 : f32 to vector<8x128xf32>
    %118 = arith.mulf %117, %116 : vector<8x128xf32>
    %cst_40 = arith.constant 5.000000e-01 : f32
    %119 = vector.broadcast %cst_40 : f32 to vector<8x128xf32>
    %120 = arith.addf %118, %119 : vector<8x128xf32>
    %121 = math.tanh %113 : vector<8x128xf32>
    %122 = vector.extract_strided_slice %120 {offsets = [0, 32], sizes = [8, 32], strides = [1, 1]} : vector<8x128xf32> to vector<8x32xf32>
    %123 = arith.mulf %122, %86 : vector<8x32xf32>
    %124 = vector.extract_strided_slice %120 {offsets = [0, 0], sizes = [8, 32], strides = [1, 1]} : vector<8x128xf32> to vector<8x32xf32>
    %125 = vector.extract_strided_slice %121 {offsets = [0, 64], sizes = [8, 32], strides = [1, 1]} : vector<8x128xf32> to vector<8x32xf32>
    %126 = arith.mulf %124, %125 : vector<8x32xf32>
    %127 = arith.addf %123, %126 : vector<8x32xf32>
    %128 = vector.extract_strided_slice %120 {offsets = [0, 96], sizes = [8, 32], strides = [1, 1]} : vector<8x128xf32> to vector<8x32xf32>
    %129 = math.tanh %127 : vector<8x32xf32>
    %130 = arith.mulf %128, %129 : vector<8x32xf32>
    %131 = tpu.concatenate %130, %109 in 1 : vector<8x32xf32>, vector<8x32xf32> -> vector<8x64xf32>
    %cst_41 = arith.constant dense<0.000000e+00> : vector<8x128xf32>
    %132 = tpu.matmul %131, %20, %cst_41 {dimension_numbers = #tpu.dot_dimension_numbers<[1], [0], [0], [1], [0, 0, 1, 1], [], []>} : vector<8x64xf32>, vector<64x128xf32>, vector<8x128xf32> -> vector<8x128xf32>
    %133 = arith.addf %132, %23 : vector<8x128xf32>
    %cst_42 = arith.constant 5.000000e-01 : f32
    %134 = vector.broadcast %cst_42 : f32 to vector<8x128xf32>
    %135 = arith.mulf %134, %133 : vector<8x128xf32>
    %136 = math.tanh %135 : vector<8x128xf32>
    %cst_43 = arith.constant 5.000000e-01 : f32
    %137 = vector.broadcast %cst_43 : f32 to vector<8x128xf32>
    %138 = arith.mulf %137, %136 : vector<8x128xf32>
    %cst_44 = arith.constant 5.000000e-01 : f32
    %139 = vector.broadcast %cst_44 : f32 to vector<8x128xf32>
    %140 = arith.addf %138, %139 : vector<8x128xf32>
    %141 = math.tanh %133 : vector<8x128xf32>
    %142 = vector.extract_strided_slice %140 {offsets = [0, 32], sizes = [8, 32], strides = [1, 1]} : vector<8x128xf32> to vector<8x32xf32>
    %143 = arith.mulf %142, %106 : vector<8x32xf32>
    %144 = vector.extract_strided_slice %140 {offsets = [0, 0], sizes = [8, 32], strides = [1, 1]} : vector<8x128xf32> to vector<8x32xf32>
    %145 = vector.extract_strided_slice %141 {offsets = [0, 64], sizes = [8, 32], strides = [1, 1]} : vector<8x128xf32> to vector<8x32xf32>
    %146 = arith.mulf %144, %145 : vector<8x32xf32>
    %147 = arith.addf %143, %146 : vector<8x32xf32>
    %148 = vector.extract_strided_slice %140 {offsets = [0, 96], sizes = [8, 32], strides = [1, 1]} : vector<8x128xf32> to vector<8x32xf32>
    %149 = math.tanh %147 : vector<8x32xf32>
    %150 = arith.mulf %148, %149 : vector<8x32xf32>
    %151 = vector.extract_strided_slice %18 {offsets = [3, 0, 0], sizes = [1, 8, 128], strides = [1, 1, 1]} : vector<7x8x128xf32> to vector<1x8x128xf32>
    %152 = vector.shape_cast %151 : vector<1x8x128xf32> to vector<8x128xf32>
    %cst_45 = arith.constant dense<0.000000e+00> : vector<8x128xf32>
    %153 = tpu.matmul %130, %19, %cst_45 {dimension_numbers = #tpu.dot_dimension_numbers<[1], [0], [0], [1], [0, 0, 1, 1], [], []>} : vector<8x32xf32>, vector<32x128xf32>, vector<8x128xf32> -> vector<8x128xf32>
    %154 = arith.addf %152, %153 : vector<8x128xf32>
    %cst_46 = arith.constant 5.000000e-01 : f32
    %155 = vector.broadcast %cst_46 : f32 to vector<8x128xf32>
    %156 = arith.mulf %155, %154 : vector<8x128xf32>
    %157 = math.tanh %156 : vector<8x128xf32>
    %cst_47 = arith.constant 5.000000e-01 : f32
    %158 = vector.broadcast %cst_47 : f32 to vector<8x128xf32>
    %159 = arith.mulf %158, %157 : vector<8x128xf32>
    %cst_48 = arith.constant 5.000000e-01 : f32
    %160 = vector.broadcast %cst_48 : f32 to vector<8x128xf32>
    %161 = arith.addf %159, %160 : vector<8x128xf32>
    %162 = math.tanh %154 : vector<8x128xf32>
    %163 = vector.extract_strided_slice %161 {offsets = [0, 32], sizes = [8, 32], strides = [1, 1]} : vector<8x128xf32> to vector<8x32xf32>
    %164 = arith.mulf %163, %127 : vector<8x32xf32>
    %165 = vector.extract_strided_slice %161 {offsets = [0, 0], sizes = [8, 32], strides = [1, 1]} : vector<8x128xf32> to vector<8x32xf32>
    %166 = vector.extract_strided_slice %162 {offsets = [0, 64], sizes = [8, 32], strides = [1, 1]} : vector<8x128xf32> to vector<8x32xf32>
    %167 = arith.mulf %165, %166 : vector<8x32xf32>
    %168 = arith.addf %164, %167 : vector<8x32xf32>
    %169 = vector.extract_strided_slice %161 {offsets = [0, 96], sizes = [8, 32], strides = [1, 1]} : vector<8x128xf32> to vector<8x32xf32>
    %170 = math.tanh %168 : vector<8x32xf32>
    %171 = arith.mulf %169, %170 : vector<8x32xf32>
    %172 = tpu.concatenate %171, %150 in 1 : vector<8x32xf32>, vector<8x32xf32> -> vector<8x64xf32>
    %cst_49 = arith.constant dense<0.000000e+00> : vector<8x128xf32>
    %173 = tpu.matmul %172, %20, %cst_49 {dimension_numbers = #tpu.dot_dimension_numbers<[1], [0], [0], [1], [0, 0, 1, 1], [], []>} : vector<8x64xf32>, vector<64x128xf32>, vector<8x128xf32> -> vector<8x128xf32>
    %174 = arith.addf %173, %23 : vector<8x128xf32>
    %cst_50 = arith.constant 5.000000e-01 : f32
    %175 = vector.broadcast %cst_50 : f32 to vector<8x128xf32>
    %176 = arith.mulf %175, %174 : vector<8x128xf32>
    %177 = math.tanh %176 : vector<8x128xf32>
    %cst_51 = arith.constant 5.000000e-01 : f32
    %178 = vector.broadcast %cst_51 : f32 to vector<8x128xf32>
    %179 = arith.mulf %178, %177 : vector<8x128xf32>
    %cst_52 = arith.constant 5.000000e-01 : f32
    %180 = vector.broadcast %cst_52 : f32 to vector<8x128xf32>
    %181 = arith.addf %179, %180 : vector<8x128xf32>
    %182 = math.tanh %174 : vector<8x128xf32>
    %183 = vector.extract_strided_slice %181 {offsets = [0, 32], sizes = [8, 32], strides = [1, 1]} : vector<8x128xf32> to vector<8x32xf32>
    %184 = arith.mulf %183, %147 : vector<8x32xf32>
    %185 = vector.extract_strided_slice %181 {offsets = [0, 0], sizes = [8, 32], strides = [1, 1]} : vector<8x128xf32> to vector<8x32xf32>
    %186 = vector.extract_strided_slice %182 {offsets = [0, 64], sizes = [8, 32], strides = [1, 1]} : vector<8x128xf32> to vector<8x32xf32>
    %187 = arith.mulf %185, %186 : vector<8x32xf32>
    %188 = arith.addf %184, %187 : vector<8x32xf32>
    %189 = vector.extract_strided_slice %181 {offsets = [0, 96], sizes = [8, 32], strides = [1, 1]} : vector<8x128xf32> to vector<8x32xf32>
    %190 = math.tanh %188 : vector<8x32xf32>
    %191 = arith.mulf %189, %190 : vector<8x32xf32>
    %192 = vector.extract_strided_slice %18 {offsets = [4, 0, 0], sizes = [1, 8, 128], strides = [1, 1, 1]} : vector<7x8x128xf32> to vector<1x8x128xf32>
    %193 = vector.shape_cast %192 : vector<1x8x128xf32> to vector<8x128xf32>
    %cst_53 = arith.constant dense<0.000000e+00> : vector<8x128xf32>
    %194 = tpu.matmul %171, %19, %cst_53 {dimension_numbers = #tpu.dot_dimension_numbers<[1], [0], [0], [1], [0, 0, 1, 1], [], []>} : vector<8x32xf32>, vector<32x128xf32>, vector<8x128xf32> -> vector<8x128xf32>
    %195 = arith.addf %193, %194 : vector<8x128xf32>
    %cst_54 = arith.constant 5.000000e-01 : f32
    %196 = vector.broadcast %cst_54 : f32 to vector<8x128xf32>
    %197 = arith.mulf %196, %195 : vector<8x128xf32>
    %198 = math.tanh %197 : vector<8x128xf32>
    %cst_55 = arith.constant 5.000000e-01 : f32
    %199 = vector.broadcast %cst_55 : f32 to vector<8x128xf32>
    %200 = arith.mulf %199, %198 : vector<8x128xf32>
    %cst_56 = arith.constant 5.000000e-01 : f32
    %201 = vector.broadcast %cst_56 : f32 to vector<8x128xf32>
    %202 = arith.addf %200, %201 : vector<8x128xf32>
    %203 = math.tanh %195 : vector<8x128xf32>
    %204 = vector.extract_strided_slice %202 {offsets = [0, 32], sizes = [8, 32], strides = [1, 1]} : vector<8x128xf32> to vector<8x32xf32>
    %205 = arith.mulf %204, %168 : vector<8x32xf32>
    %206 = vector.extract_strided_slice %202 {offsets = [0, 0], sizes = [8, 32], strides = [1, 1]} : vector<8x128xf32> to vector<8x32xf32>
    %207 = vector.extract_strided_slice %203 {offsets = [0, 64], sizes = [8, 32], strides = [1, 1]} : vector<8x128xf32> to vector<8x32xf32>
    %208 = arith.mulf %206, %207 : vector<8x32xf32>
    %209 = arith.addf %205, %208 : vector<8x32xf32>
    %210 = vector.extract_strided_slice %202 {offsets = [0, 96], sizes = [8, 32], strides = [1, 1]} : vector<8x128xf32> to vector<8x32xf32>
    %211 = math.tanh %209 : vector<8x32xf32>
    %212 = arith.mulf %210, %211 : vector<8x32xf32>
    %213 = tpu.concatenate %212, %191 in 1 : vector<8x32xf32>, vector<8x32xf32> -> vector<8x64xf32>
    %cst_57 = arith.constant dense<0.000000e+00> : vector<8x128xf32>
    %214 = tpu.matmul %213, %20, %cst_57 {dimension_numbers = #tpu.dot_dimension_numbers<[1], [0], [0], [1], [0, 0, 1, 1], [], []>} : vector<8x64xf32>, vector<64x128xf32>, vector<8x128xf32> -> vector<8x128xf32>
    %215 = arith.addf %214, %23 : vector<8x128xf32>
    %cst_58 = arith.constant 5.000000e-01 : f32
    %216 = vector.broadcast %cst_58 : f32 to vector<8x128xf32>
    %217 = arith.mulf %216, %215 : vector<8x128xf32>
    %218 = math.tanh %217 : vector<8x128xf32>
    %cst_59 = arith.constant 5.000000e-01 : f32
    %219 = vector.broadcast %cst_59 : f32 to vector<8x128xf32>
    %220 = arith.mulf %219, %218 : vector<8x128xf32>
    %cst_60 = arith.constant 5.000000e-01 : f32
    %221 = vector.broadcast %cst_60 : f32 to vector<8x128xf32>
    %222 = arith.addf %220, %221 : vector<8x128xf32>
    %223 = math.tanh %215 : vector<8x128xf32>
    %224 = vector.extract_strided_slice %222 {offsets = [0, 32], sizes = [8, 32], strides = [1, 1]} : vector<8x128xf32> to vector<8x32xf32>
    %225 = arith.mulf %224, %188 : vector<8x32xf32>
    %226 = vector.extract_strided_slice %222 {offsets = [0, 0], sizes = [8, 32], strides = [1, 1]} : vector<8x128xf32> to vector<8x32xf32>
    %227 = vector.extract_strided_slice %223 {offsets = [0, 64], sizes = [8, 32], strides = [1, 1]} : vector<8x128xf32> to vector<8x32xf32>
    %228 = arith.mulf %226, %227 : vector<8x32xf32>
    %229 = arith.addf %225, %228 : vector<8x32xf32>
    %230 = vector.extract_strided_slice %222 {offsets = [0, 96], sizes = [8, 32], strides = [1, 1]} : vector<8x128xf32> to vector<8x32xf32>
    %231 = math.tanh %229 : vector<8x32xf32>
    %232 = arith.mulf %230, %231 : vector<8x32xf32>
    %233 = vector.extract_strided_slice %18 {offsets = [5, 0, 0], sizes = [1, 8, 128], strides = [1, 1, 1]} : vector<7x8x128xf32> to vector<1x8x128xf32>
    %234 = vector.shape_cast %233 : vector<1x8x128xf32> to vector<8x128xf32>
    %cst_61 = arith.constant dense<0.000000e+00> : vector<8x128xf32>
    %235 = tpu.matmul %212, %19, %cst_61 {dimension_numbers = #tpu.dot_dimension_numbers<[1], [0], [0], [1], [0, 0, 1, 1], [], []>} : vector<8x32xf32>, vector<32x128xf32>, vector<8x128xf32> -> vector<8x128xf32>
    %236 = arith.addf %234, %235 : vector<8x128xf32>
    %cst_62 = arith.constant 5.000000e-01 : f32
    %237 = vector.broadcast %cst_62 : f32 to vector<8x128xf32>
    %238 = arith.mulf %237, %236 : vector<8x128xf32>
    %239 = math.tanh %238 : vector<8x128xf32>
    %cst_63 = arith.constant 5.000000e-01 : f32
    %240 = vector.broadcast %cst_63 : f32 to vector<8x128xf32>
    %241 = arith.mulf %240, %239 : vector<8x128xf32>
    %cst_64 = arith.constant 5.000000e-01 : f32
    %242 = vector.broadcast %cst_64 : f32 to vector<8x128xf32>
    %243 = arith.addf %241, %242 : vector<8x128xf32>
    %244 = math.tanh %236 : vector<8x128xf32>
    %245 = vector.extract_strided_slice %243 {offsets = [0, 32], sizes = [8, 32], strides = [1, 1]} : vector<8x128xf32> to vector<8x32xf32>
    %246 = arith.mulf %245, %209 : vector<8x32xf32>
    %247 = vector.extract_strided_slice %243 {offsets = [0, 0], sizes = [8, 32], strides = [1, 1]} : vector<8x128xf32> to vector<8x32xf32>
    %248 = vector.extract_strided_slice %244 {offsets = [0, 64], sizes = [8, 32], strides = [1, 1]} : vector<8x128xf32> to vector<8x32xf32>
    %249 = arith.mulf %247, %248 : vector<8x32xf32>
    %250 = arith.addf %246, %249 : vector<8x32xf32>
    %251 = vector.extract_strided_slice %243 {offsets = [0, 96], sizes = [8, 32], strides = [1, 1]} : vector<8x128xf32> to vector<8x32xf32>
    %252 = math.tanh %250 : vector<8x32xf32>
    %253 = arith.mulf %251, %252 : vector<8x32xf32>
    %254 = tpu.concatenate %253, %232 in 1 : vector<8x32xf32>, vector<8x32xf32> -> vector<8x64xf32>
    %cst_65 = arith.constant dense<0.000000e+00> : vector<8x128xf32>
    %255 = tpu.matmul %254, %20, %cst_65 {dimension_numbers = #tpu.dot_dimension_numbers<[1], [0], [0], [1], [0, 0, 1, 1], [], []>} : vector<8x64xf32>, vector<64x128xf32>, vector<8x128xf32> -> vector<8x128xf32>
    %256 = arith.addf %255, %23 : vector<8x128xf32>
    %cst_66 = arith.constant 5.000000e-01 : f32
    %257 = vector.broadcast %cst_66 : f32 to vector<8x128xf32>
    %258 = arith.mulf %257, %256 : vector<8x128xf32>
    %259 = math.tanh %258 : vector<8x128xf32>
    %cst_67 = arith.constant 5.000000e-01 : f32
    %260 = vector.broadcast %cst_67 : f32 to vector<8x128xf32>
    %261 = arith.mulf %260, %259 : vector<8x128xf32>
    %cst_68 = arith.constant 5.000000e-01 : f32
    %262 = vector.broadcast %cst_68 : f32 to vector<8x128xf32>
    %263 = arith.addf %261, %262 : vector<8x128xf32>
    %264 = math.tanh %256 : vector<8x128xf32>
    %265 = vector.extract_strided_slice %263 {offsets = [0, 32], sizes = [8, 32], strides = [1, 1]} : vector<8x128xf32> to vector<8x32xf32>
    %266 = arith.mulf %265, %229 : vector<8x32xf32>
    %267 = vector.extract_strided_slice %263 {offsets = [0, 0], sizes = [8, 32], strides = [1, 1]} : vector<8x128xf32> to vector<8x32xf32>
    %268 = vector.extract_strided_slice %264 {offsets = [0, 64], sizes = [8, 32], strides = [1, 1]} : vector<8x128xf32> to vector<8x32xf32>
    %269 = arith.mulf %267, %268 : vector<8x32xf32>
    %270 = arith.addf %266, %269 : vector<8x32xf32>
    %271 = vector.extract_strided_slice %263 {offsets = [0, 96], sizes = [8, 32], strides = [1, 1]} : vector<8x128xf32> to vector<8x32xf32>
    %272 = math.tanh %270 : vector<8x32xf32>
    %273 = arith.mulf %271, %272 : vector<8x32xf32>
    %274 = vector.extract_strided_slice %18 {offsets = [6, 0, 0], sizes = [1, 8, 128], strides = [1, 1, 1]} : vector<7x8x128xf32> to vector<1x8x128xf32>
    %275 = vector.shape_cast %274 : vector<1x8x128xf32> to vector<8x128xf32>
    %cst_69 = arith.constant dense<0.000000e+00> : vector<8x128xf32>
    %276 = tpu.matmul %253, %19, %cst_69 {dimension_numbers = #tpu.dot_dimension_numbers<[1], [0], [0], [1], [0, 0, 1, 1], [], []>} : vector<8x32xf32>, vector<32x128xf32>, vector<8x128xf32> -> vector<8x128xf32>
    %277 = arith.addf %275, %276 : vector<8x128xf32>
    %cst_70 = arith.constant 5.000000e-01 : f32
    %278 = vector.broadcast %cst_70 : f32 to vector<8x128xf32>
    %279 = arith.mulf %278, %277 : vector<8x128xf32>
    %280 = math.tanh %279 : vector<8x128xf32>
    %cst_71 = arith.constant 5.000000e-01 : f32
    %281 = vector.broadcast %cst_71 : f32 to vector<8x128xf32>
    %282 = arith.mulf %281, %280 : vector<8x128xf32>
    %cst_72 = arith.constant 5.000000e-01 : f32
    %283 = vector.broadcast %cst_72 : f32 to vector<8x128xf32>
    %284 = arith.addf %282, %283 : vector<8x128xf32>
    %285 = math.tanh %277 : vector<8x128xf32>
    %286 = vector.extract_strided_slice %284 {offsets = [0, 32], sizes = [8, 32], strides = [1, 1]} : vector<8x128xf32> to vector<8x32xf32>
    %287 = arith.mulf %286, %250 : vector<8x32xf32>
    %288 = vector.extract_strided_slice %284 {offsets = [0, 0], sizes = [8, 32], strides = [1, 1]} : vector<8x128xf32> to vector<8x32xf32>
    %289 = vector.extract_strided_slice %285 {offsets = [0, 64], sizes = [8, 32], strides = [1, 1]} : vector<8x128xf32> to vector<8x32xf32>
    %290 = arith.mulf %288, %289 : vector<8x32xf32>
    %291 = arith.addf %287, %290 : vector<8x32xf32>
    %292 = vector.extract_strided_slice %284 {offsets = [0, 96], sizes = [8, 32], strides = [1, 1]} : vector<8x128xf32> to vector<8x32xf32>
    %293 = math.tanh %291 : vector<8x32xf32>
    %294 = arith.mulf %292, %293 : vector<8x32xf32>
    %295 = tpu.concatenate %294, %273 in 1 : vector<8x32xf32>, vector<8x32xf32> -> vector<8x64xf32>
    %cst_73 = arith.constant dense<0.000000e+00> : vector<8x128xf32>
    %296 = tpu.matmul %295, %20, %cst_73 {dimension_numbers = #tpu.dot_dimension_numbers<[1], [0], [0], [1], [0, 0, 1, 1], [], []>} : vector<8x64xf32>, vector<64x128xf32>, vector<8x128xf32> -> vector<8x128xf32>
    %297 = arith.addf %296, %23 : vector<8x128xf32>
    %cst_74 = arith.constant 5.000000e-01 : f32
    %298 = vector.broadcast %cst_74 : f32 to vector<8x128xf32>
    %299 = arith.mulf %298, %297 : vector<8x128xf32>
    %300 = math.tanh %299 : vector<8x128xf32>
    %cst_75 = arith.constant 5.000000e-01 : f32
    %301 = vector.broadcast %cst_75 : f32 to vector<8x128xf32>
    %302 = arith.mulf %301, %300 : vector<8x128xf32>
    %cst_76 = arith.constant 5.000000e-01 : f32
    %303 = vector.broadcast %cst_76 : f32 to vector<8x128xf32>
    %304 = arith.addf %302, %303 : vector<8x128xf32>
    %305 = math.tanh %297 : vector<8x128xf32>
    %306 = vector.extract_strided_slice %304 {offsets = [0, 32], sizes = [8, 32], strides = [1, 1]} : vector<8x128xf32> to vector<8x32xf32>
    %307 = arith.mulf %306, %270 : vector<8x32xf32>
    %308 = vector.extract_strided_slice %304 {offsets = [0, 0], sizes = [8, 32], strides = [1, 1]} : vector<8x128xf32> to vector<8x32xf32>
    %309 = vector.extract_strided_slice %305 {offsets = [0, 64], sizes = [8, 32], strides = [1, 1]} : vector<8x128xf32> to vector<8x32xf32>
    %310 = arith.mulf %308, %309 : vector<8x32xf32>
    %311 = arith.addf %307, %310 : vector<8x32xf32>
    %312 = vector.extract_strided_slice %304 {offsets = [0, 96], sizes = [8, 32], strides = [1, 1]} : vector<8x128xf32> to vector<8x32xf32>
    %313 = math.tanh %311 : vector<8x32xf32>
    %314 = arith.mulf %312, %313 : vector<8x32xf32>
    %c0_77 = arith.constant 0 : index
    %c0_78 = arith.constant 0 : index
    %315 = vector.load %arg8[%c0_77, %c0_78] : memref<32x128xf32, #tpu.memory_space<vmem>>, vector<32x128xf32>
    %cst_79 = arith.constant dense<0.000000e+00> : vector<8x128xf32>
    %316 = tpu.matmul %314, %315, %cst_79 {dimension_numbers = #tpu.dot_dimension_numbers<[1], [0], [0], [1], [0, 0, 1, 1], [], []>} : vector<8x32xf32>, vector<32x128xf32>, vector<8x128xf32> -> vector<8x128xf32>
    %c0_80 = arith.constant 0 : index
    %c0_81 = arith.constant 0 : index
    %317 = vector.load %arg9[%c0_80, %c0_81] : memref<1x128xf32, #tpu.memory_space<vmem>>, vector<1x128xf32>
    %318 = vector.broadcast %317 : vector<1x128xf32> to vector<8x128xf32>
    %319 = arith.addf %316, %318 : vector<8x128xf32>
    %c0_82 = arith.constant 0 : index
    %c0_83 = arith.constant 0 : index
    %320 = vector.load %arg10[%c0_82, %c0_83] : memref<8x128xf32, #tpu.memory_space<vmem>>, vector<8x128xf32>
    tpu.vector_store %arg10[%c0_82, %c0_83], %319 {strides = array<i32>} : memref<8x128xf32, #tpu.memory_space<vmem>>, vector<8x128xf32>,
    return
  }
}

</mosaic_0001>

<bundles_post_ra>
// kernel: tpu_custom_call.1
= control target key start
LH: loop header
LB: loop body
LE: loop exit
PB: predicated region body
PF: predicated region fallthrough
CT: control target
= control target key end

     0   :  { %15 = vsyncpa [#allocation3], 0  ;;  %s3158_s0 = inlined_call_operand.vmem [shape: f32[64,12], index: 0, kind: input, shape index: {}]   ;;  %s3159_s1 = inlined_call_operand.hbm [shape: f32[12,32], index: 1, kind: input, shape index: {}]   ;;  %s3160_s2 = inlined_call_operand.vmem [shape: f32[1,32], index: 2, kind: input, shape index: {}]   ;;  %s3161_s3 = inlined_call_operand.vmem [shape: f32[32,128], index: 3, kind: input, shape index: {}]   ;;  %s3162_s4 = inlined_call_operand.hbm [shape: f32[32,128], index: 4, kind: input, shape index: {}]   ;;  %s3163_s5 = inlined_call_operand.vmem [shape: f32[1,128], index: 5, kind: input, shape index: {}]   ;;  %s3164_s6 = inlined_call_operand.vmem [shape: f32[64,128], index: 6, kind: input, shape index: {}]   ;;  %s3165_s7 = inlined_call_operand.vmem [shape: f32[1,128], index: 7, kind: input, shape index: {}]   ;;  %s3166_s8 = inlined_call_operand.hbm [shape: f32[32,128], index: 8, kind: input, shape index: {}]   ;;  %s3167_s9 = inlined_call_operand.vmem [shape: f32[1,128], index: 9, kind: input, shape index: {}]   ;;  %s3168_s10 = inlined_call_operand.hbm [shape: f32[8,128], index: 10, kind: output, shape index: {}]  }
   0x1   :  { %16 = vsyncpa [#allocation6], 0 }
   0x2   :  { %17 = vsyncpa [#allocation4], 0  ;;  %s2668_s13 = smov [#allocation5]   ;;  %s2669_s15 = smov [#allocation2]  }
   0x3   :  { %s41_s14 = sshll.u32 %s2668_s13, 4  ;;  %s25_s16 = sshll.u32 %s2669_s15, 4  ;;  %s42_s14 = int_to_ptr.vmem [resolvable:$true] %s41_s14  ;;  %s2735_s16 = int_to_ptr.vmem [resolvable:$true] %s25_s16 }
   0x4   :  { %s2574_s19 = scalar_lea.hbm %s3162_s4, 512 }
   0x5   :  { %p2575_p0 = scmp.ne.s32.totalorder %s3162_s4, %s2574_s19  ;;  %p2578_p1 = scmp.lt.u32.totalorder %s2574_s19, %s3162_s4 }
   0x7   :  { %p2580_p2 = pnand %p2578_p1, %p2575_p0 }
   0x9   :  { %2583 = shalt.err (!%p2580_p2)
}
   0xa   :  { %s2584_s24 = scalar_lea.vmem %s42_s14, 512  ;;  %p2589_p4 = scmp.lt.s32.totalorder %s42_s14, %s42_s14 }
   0xb   :  { %p2585_p3 = scmp.ne.s32.totalorder %s42_s14, %s2584_s24  ;;  %p2590_p5 = scmp.lt.s32.totalorder %s2584_s24, %s2584_s24 }
   0xd   :  { %p2591_p6 = por %p2590_p5, %p2589_p4 }
   0xf   :  { %p2592_p7 = pnand %p2591_p6, %p2585_p3 }
  0x11   :  { %2595 = shalt.err (!%p2592_p7)
}
  0x12   :  { %s2670_s25 = smov 128   ;;  %s2671_s26 = smov 8  }
  0x13   :  { %47 = dma.hbm_to_vmem [thread:$0]  %s3162_s4, 512, %s42_s14, [#allocation6], %s2670_s25, %s2670_s25, %s2671_s26  }
  0x14   :  { %s2596_s11 = scalar_lea.hbm %s3159_s1, 256 }
  0x15   :  { %p2597_p8 = scmp.ne.s32.totalorder %s3159_s1, %s2596_s11  ;;  %p2600_p9 = scmp.lt.u32.totalorder %s2596_s11, %s3159_s1 }
  0x17   :  { %p2602_p10 = pnand %p2600_p9, %p2597_p8 }
  0x19   :  { %2605 = shalt.err (!%p2602_p10)
}
  0x1a   :  { %s2606_s18 = scalar_lea.vmem %s2735_s16, 256  ;;  %p2611_p12 = scmp.lt.s32.totalorder %s2735_s16, %s2735_s16 }
  0x1b   :  { %p2607_p11 = scmp.ne.s32.totalorder %s2735_s16, %s2606_s18  ;;  %p2612_p13 = scmp.lt.s32.totalorder %s2606_s18, %s2606_s18 }
  0x1d   :  { %p2613_p0 = por %p2612_p13, %p2611_p12 }
  0x1f   :  { %p2614_p1 = pnand %p2613_p0, %p2607_p11 }
  0x21   :  { %2617 = shalt.err (!%p2614_p1)
}
  0x22   :  { %31 = dma.hbm_to_vmem [thread:$0]  %s3159_s1, 256, %s2735_s16, [#allocation3], %s2670_s25, %s2670_s25, %s2671_s26  }
  0x23   :  { %s2672_s19 = smov [#allocation7]   ;;  %s2618_s23 = scalar_lea.hbm %s3166_s8, 512 }
  0x24   :  { %s59_s20 = sshll.u32 %s2672_s19, 4  ;;  %p2619_p2 = scmp.ne.s32.totalorder %s3166_s8, %s2618_s23  ;;  %s60_s20 = int_to_ptr.vmem [resolvable:$true] %s59_s20 }
  0x25   :  { %p2622_p3 = scmp.lt.u32.totalorder %s2618_s23, %s3166_s8 }
  0x27   :  { %p2624_p4 = pnand %p2622_p3, %p2619_p2 }
  0x29   :  { %2627 = shalt.err (!%p2624_p4)
}
  0x2a   :  { %s2628_s30 = scalar_lea.vmem %s60_s20, 512  ;;  %p2633_p6 = scmp.lt.s32.totalorder %s60_s20, %s60_s20 }
  0x2b   :  { %p2629_p5 = scmp.ne.s32.totalorder %s60_s20, %s2628_s30  ;;  %p2634_p7 = scmp.lt.s32.totalorder %s2628_s30, %s2628_s30 }
  0x2d   :  { %p2635_p8 = por %p2634_p7, %p2633_p6 }
  0x2f   :  { %p2636_p9 = pnand %p2635_p8, %p2629_p5 }
  0x31   :  { %2639 = shalt.err (!%p2636_p9)
}
  0x32   :  { %65 = dma.hbm_to_vmem [thread:$0]  %s3166_s8, 512, %s60_s20, [#allocation6], %s2670_s25, %s2670_s25, %s2671_s26  }
  0x33   :  { %2662 = dma.done.wait [#allocation3], 256  }
  0x34   :  { %2663 = vsyncadd [#allocation3], 4294967040 }
  0x35   :  { %2664 = dma.done.wait [#allocation6], 1024  }
  0x36   :  { %2665 = vsyncadd [#allocation6], 4294966272  ;;  %v2673_v0 = vmov 0.0|0.0   ;;  %vm119_vm0 = vcmask 1043456   ;;  %vm94_vm1 = vcmask 97280   ;;  %vm2674_vm2 = vmmov 1  }
  0x37   :  { %2319 = vmatprep.subr.bf16.mxu1 %v2673_v0  ;;  %vm2314_vm3 = vmpackc.low %vm119_vm0, %vm2674_vm2  ;;  %v85_v1 = vld [vmem:[#allocation2] sm:$0xff]  ;;  %v86_v2 = vld [vmem:[#allocation2 + $0x8] sm:$0xf]  ;;  %vm2675_vm4 = vmmov 0   ;;  %v2676_v18 = vmov 0.0   ;;  %vm254_vm5 = vcmask 261120  }
  0x38   :  { %v77_v3 = vld [vmem:[%s3158_s0] sm:$0xff]  ;;  %v2313_v4 = vpack.c.bf16 %v86_v2, %v85_v1  ;;  %v78_v5 = vld [vmem:[%s3158_s0 + $0x8] sm:$0xff]  ;;  %v79_v6 = vld [vmem:[%s3158_s0 + $0x10] sm:$0xff]  ;;  %2071 = vmatprep.mubr.msk.f32.mxu1 %vm2675_vm4, %v2676_v18  ;;  %s2677_s8 = smov 64   ;;  %s2678_s25 = smov 32   ;;  %vm496_vm6 = vcmask 523264  }
  0x39   :  { %2051 = vmatprep.mubr.msk.f32.mxu0 %vm94_vm1, %v77_v3  ;;  %v80_v7 = vld [vmem:[%s3158_s0 + $0x18] sm:$0xff]  ;;  %v81_v8 = vld [vmem:[%s3158_s0 + $0x20] sm:$0xff]  ;;  %v82_v9 = vld [vmem:[%s3158_s0 + $0x28] sm:$0xff]  ;;  %s2679_s1 = smov [#allocation8]  }
  0x3a   :  { %2315 = vmatprep.subr.msk.bf16.mxu0 %vm2314_vm3, %v2313_v4  ;;  %v83_v10 = vld [vmem:[%s3158_s0 + $0x30] sm:$0xff]  ;;  %v84_v11 = vld [vmem:[%s3158_s0 + $0x38] sm:$0xff]  ;;  %v243_v12 = vld [vmem:[%s3161_s3] sm:$0xff]  ;;  %s1879_s16 = sshll.u32 %s2679_s1, 4  ;;  %s1880_s16 = int_to_ptr.vmem [resolvable:$true] %s1879_s16 }
  0x3b   :  { %2318 = vmatpush3.bf16.msk.msra.mxu0 %vm2314_vm3, %v2313_v4  ;;  %v244_v13 = vld [vmem:[%s3161_s3 + $0x8] sm:$0xff]  ;;  %v245_v15 = vld [vmem:[%s3161_s3 + $0x10] sm:$0xff]  ;;  %v246_v16 = vld [vmem:[%s3161_s3 + $0x18] sm:$0xff]  ;;  %s2640_s0 = scalar_lea.vmem %s1880_s16, 128  ;;  %p2645_p11 = scmp.lt.s32.totalorder %s1880_s16, %s1880_s16 }
  0x3c   :  { %2331 = vmatprep.subr.bf16.mxu0 %v2673_v0  ;;  %v2320_v14 = vpack.c.bf16 %v244_v13, %v243_v12  ;;  %v2323_v17 = vpack.c.bf16 %v246_v16, %v245_v15  ;;  %v1889_v19 = vld [vmem:[%s3160_s2] ss:$0 sm:$0xff]  ;;  %v376_v24 = vld [vmem:[#allocation5] sm:$0xff]  ;;  %v377_v25 = vld [vmem:[#allocation5 + $0x8] sm:$0xff]  ;;  %p2641_p10 = scmp.ne.s32.totalorder %s1880_s16, %s2640_s0  ;;  %p2646_p12 = scmp.lt.s32.totalorder %s2640_s0, %s2640_s0 }
  0x3d   :  { %v2842_v31 = vpack.c.bf16 %v377_v25, %v376_v24  ;;  %v378_v34 = vld [vmem:[#allocation5 + $0x10] sm:$0xff]  ;;  %v379_v35 = vld [vmem:[#allocation5 + $0x18] sm:$0xff]  ;;  %v383_v12 = vld [vmem:[%s3164_s6 + $0x18] sm:$0xff] }
  0x3e   :  { %2052 = vmatmul.mubr.msk.f32.vlgmr.msra.gmra.mrb[0].mxu0 %vm94_vm1, %v78_v5  ;;  %2321 = vmatpush3.bf16.msra.mxu1 %v2320_v14  ;;  %v2848_v41 = vpack.c.bf16 %v379_v35, %v378_v34  ;;  %v2881_v57 = vld [vmem:[%s3163_s5] ss:$0 sm:$0xff]  ;;  %v385_v15 = vld [vmem:[%s3164_s6 + $0x28] sm:$0xff]  ;;  %p2647_p13 = por %p2646_p12, %p2645_p11 }
  0x3f   :  { %2054 = vmatprep.mubr.msk.f32.mxu0 %vm94_vm1, %v79_v6  ;;  %2322 = vmatprep.subr.bf16.mxu1 %v2673_v0  ;;  %v384_v14 = vld [vmem:[%s3164_s6 + $0x20] sm:$0xff] }
  0x40   :  { %v2914_v16 = vpack.c.bf16 %v385_v15, %v384_v14  ;;  %p2648_p0 = pnand %p2647_p13, %p2641_p10 }
  0x42   :  { %2055 = vmatmul.mubr.msk.f32.gmra.mrb[2].mxu0 %vm94_vm1, %v80_v7  ;;  %2324 = vmatpush3.bf16.msra.mxu1 %v2323_v17  ;;  %v386_v17 = vld [vmem:[%s3164_s6 + $0x30] sm:$0xff] }
  0x43   :  { %2057 = vmatprep.mubr.msk.f32.mxu0 %vm94_vm1, %v81_v8  ;;  %2325 = vmatprep.subr.bf16.mxu1 %v2673_v0  ;;  %v380_v8 = vld [vmem:[%s3164_s6] sm:$0xff] }
  0x46   :  { %2058 = vmatmul.mubr.msk.f32.gmra.mrb[4].mxu0 %vm94_vm1, %v82_v9  ;;  %v381_v9 = vld [vmem:[%s3164_s6 + $0x8] sm:$0xff] }
  0x47   :  { %2060 = vmatprep.mubr.msk.f32.mxu0 %vm94_vm1, %v83_v10  ;;  %v382_v10 = vld [vmem:[%s3164_s6 + $0x10] sm:$0xff] }
  0x48   :  { %v2904_v13 = vpack.c.bf16 %v383_v12, %v382_v10 }
  0x4a   :  { %2061 = vmatmul.mubr.msk.f32.gmra.mrb[6].mxu0 %vm94_vm1, %v84_v11  ;;  %v2898_v11 = vpack.c.bf16 %v381_v9, %v380_v8 }
  0x4b   :  { %2119 = vmatprep.mubr.msk.f32.mxu0 %vm2675_vm4, %v2676_v18 }
  0x4c   :  { %2333 = vmatpush3.bf16.msra.mxu0 %v2898_v11 }
  0x4d   :  { %2334 = vmatprep.subr.bf16.mxu0 %v2673_v0 }
  0x50   :  { %2336 = vmatpush3.bf16.msra.mxu0 %v2904_v13 }
  0x51   :  { %2337 = vmatprep.subr.bf16.mxu0 %v2673_v0 }
  0x54   :  { %2339 = vmatpush3.bf16.msra.mxu0 %v2914_v16 }
  0x55   :  { %2340 = vmatprep.subr.bf16.mxu0 %v2673_v0 }
 0x111   :  { %v2053_v20 = vpop.f32.mrb[0].mxu0 }
 0x112   :  { %v195_v21 = vadd.f32 %v2053_v20, %v1889_v19  ;;  %v189_v22 = vpop.f32.mrb[1].mxu0 }
 0x113   :  { %v190_v23 = vadd.f32 %v1889_v19, %v189_v22 }
 0x114   :  { %v229_v26 = vmax.f32 %v195_v21, 0.0 }
 0x115   :  { %v228_v27 = vmax.f32 %v190_v23, 0.0  ;;  %v2056_v28 = vpop.f32.mrb[2].mxu0 }
 0x116   :  { %v205_v29 = vadd.f32 %v2056_v28, %v1889_v19  ;;  %v199_v30 = vpop.f32.mrb[3].mxu0 }
 0x117   :  { %v236_v32 = vmax.f32 %v228_v27, %v229_v26  ;;  %v200_v33 = vadd.f32 %v1889_v19, %v199_v30 }
 0x118   :  { %v231_v36 = vmax.f32 %v205_v29, 0.0 }
 0x119   :  { %v230_v37 = vmax.f32 %v200_v33, 0.0  ;;  %v2059_v38 = vpop.f32.mrb[4].mxu0  ;;  %2072 = vmatmul.mubr.msk.f32.vlgmr.msra.gmra.mrb[0].mxu1 %vm254_vm5, %v236_v32 }
 0x11a   :  { %v215_v39 = vadd.f32 %v2059_v38, %v1889_v19  ;;  %2327 = vmatpush3.bf16.msra.mxu1 %v2842_v31  ;;  %v209_v40 = vpop.f32.mrb[5].mxu0  ;;  %2074 = vmatprep.mubr.msk.f32.mxu1 %vm2675_vm4, %v2676_v18 }
 0x11b   :  { %v237_v42 = vmax.f32 %v229_v26, %v230_v37  ;;  %v238_v43 = vmax.f32 %v230_v37, %v231_v36  ;;  %v210_v44 = vadd.f32 %v1889_v19, %v209_v40  ;;  %2328 = vmatprep.subr.bf16.mxu1 %v2673_v0  ;;  %v2953_v26 = vld [vmem:[%s3165_s7] ss:$0 sm:$0xff] }
 0x11c   :  { %v233_v45 = vmax.f32 %v215_v39, 0.0 }
 0x11d   :  { %v232_v46 = vmax.f32 %v210_v44, 0.0  ;;  %v2062_v47 = vpop.f32.mrb[6].mxu0  ;;  %2075 = vmatmul.mubr.msk.f32.gmra.mrb[2].mxu1 %vm254_vm5, %v237_v42 }
 0x11e   :  { %v225_v48 = vadd.f32 %v2062_v47, %v1889_v19  ;;  %v219_v49 = vpop.f32.mrb[7].mxu0  ;;  %2077 = vmatprep.mubr.msk.f32.mxu1 %vm2675_vm4, %v2676_v18  ;;  %2330 = vmatpush3.bf16.msra.mxu1 %v2848_v41 }
 0x11f   :  { %v239_v50 = vmax.f32 %v231_v36, %v232_v46  ;;  %v240_v51 = vmax.f32 %v232_v46, %v233_v45  ;;  %v220_v52 = vadd.f32 %v1889_v19, %v219_v49  ;;  %2343 = vmatprep.subr.bf16.mxu1 %v2673_v0  ;;  %v387_v19 = vld [vmem:[%s3164_s6 + $0x38] sm:$0xff] }
 0x120   :  { %v235_v53 = vmax.f32 %v225_v48, 0.0  ;;  %v2925_v21 = vpack.c.bf16 %v387_v19, %v386_v17 }
 0x121   :  { %v234_v54 = vmax.f32 %v220_v52, 0.0  ;;  %2078 = vmatmul.mubr.msk.f32.gmra.mrb[4].mxu1 %vm254_vm5, %v238_v43 }
 0x122   :  { %2080 = vmatprep.mubr.msk.f32.mxu1 %vm2675_vm4, %v2676_v18  ;;  %2342 = vmatpush3.bf16.msra.mxu0 %v2925_v21 }
 0x123   :  { %v241_v55 = vmax.f32 %v233_v45, %v234_v54  ;;  %v242_v56 = vmax.f32 %v234_v54, %v235_v53  ;;  %2349 = vmatprep.subr.bf16.mxu0 %v2673_v0 }
 0x125   :  { %2081 = vmatmul.mubr.msk.f32.gmra.mrb[6].mxu1 %vm254_vm5, %v239_v50 }
 0x126   :  { %2083 = vmatprep.mubr.msk.f32.mxu1 %vm2675_vm4, %v2676_v18 }
 0x129   :  { %2084 = vmatmul.mubr.msk.f32.gmra.mrb[8].mxu1 %vm254_vm5, %v240_v51 }
 0x12a   :  { %2086 = vmatprep.mubr.msk.f32.mxu1 %vm2675_vm4, %v2676_v18 }
 0x12d   :  { %2087 = vmatmul.mubr.msk.f32.gmra.mrb[10].mxu1 %vm254_vm5, %v241_v55 }
 0x12e   :  { %2089 = vmatprep.mubr.msk.f32.mxu1 %vm2675_vm4, %v2676_v18 }
 0x131   :  { %2090 = vmatmul.mubr.msk.f32.gmra.mrb[12].mxu1 %vm254_vm5, %v242_v56 }
 0x132   :  { %2100 = vmatprep.mubr.msk.f32.mxu1 %vm2675_vm4, %v2676_v18 }
 0x135   :  { %2101 = vmatmul.mubr.f32.vlgmr.msra.gmra.mrb[0].mxu1 %v2676_v18 }
 0x136   :  { %2345 = vmatpush3.bf16.msra.mxu1 %v2842_v31  ;;  %2130 = vmatprep.mubr.msk.f32.mxu1 %vm2675_vm4, %v2676_v18 }
 0x137   :  { %2346 = vmatprep.subr.bf16.mxu1 %v2673_v0 }
 0x13a   :  { %2348 = vmatpush3.bf16.msra.mxu1 %v2848_v41 }
 0x13b   :  { %2361 = vmatprep.subr.bf16.mxu1 %v2673_v0 }
 0x208   :  { %v464_v58 = vpop.f32.mrb[0].mxu1 }
 0x209   :  { %v2457_v59 = vadd.f32 %v2881_v57, %v464_v58  ;;  %v2102_v60 = vpop.f32.mrb[1].mxu1 }
 0x20b   :  { %2490 = vtanh.f32 %v2457_v59  ;;  %v469_v62 = vmul.f32 0.5, %v2457_v59 }
 0x20d   :  { %2492 = vtanh.f32 %v469_v62 }
 0x215   :  { %v2491_v61 = vpop.eup %2490 }
 0x216   :  { %476 = vrot.lane.b32.xlu0 %v2491_v61, %s2677_s8 }
 0x217   :  { %v2493_v63 = vpop.eup %2492 }
 0x218   :  { %v471_v1 = vmul.f32 0.5, %v2493_v63 }
 0x21a   :  { %v472_v2 = vadd.f32 0.5, %v471_v1 }
 0x21c   :  { %v474_v5 = vmul.f32 0.0, %v472_v2 }
 0x288   :  { %v477_v3 = vpop.permute.xlu0 %476 }
 0x289   :  { %v479_v4 = vmul.f32 %v477_v3, %v472_v2 }
 0x28b   :  { %481 = vrot.lane.b32.xlu0 %v479_v4, %s2678_s25 }
 0x2fd   :  { %v482_v6 = vpop.permute.xlu0 %481 }
 0x2fe   :  { %v2886_v7 = vadd.f32 %v482_v6, %v474_v5 }
 0x300   :  { %2494 = vtanh.f32 %v2886_v7 }
 0x30a   :  { %v2495_v20 = vpop.eup %2494 }
 0x30b   :  { %487 = vrot.lane.b32.xlu1 %v2495_v20, %s2677_s8 }
 0x37d   :  { %v488_v22 = vpop.permute.xlu1 %487 }
 0x37e   :  { %v490_v23 = vmul.f32 %v488_v22, %v472_v2 }
 0x380   :  { %492 = vrot.lane.b32.xlu1 %v490_v23, %s2678_s25 }
 0x3f2   :  { %v493_v24 = vpop.permute.xlu1 %492 }
 0x3f3   :  { %v495_v25 = vsel %vm254_vm5, %v493_v24, 0.0  ;;  %2131 = vmatmul.mubr.msk.f32.vlgmr.msra.gmra.mrb[2].mxu1 %vm254_vm5, %v493_v24 }
 0x3f4   :  { %2120 = vmatmul.mubr.msk.f32.vlgmr.msra.gmra.mrb[8].mxu0 %vm496_vm6, %v495_v25  ;;  %2363 = vmatpush3.bf16.msra.mxu1 %v2842_v31 }
 0x3f5   :  { %2351 = vmatpush3.bf16.msra.mxu0 %v2898_v11  ;;  %2364 = vmatprep.subr.bf16.mxu1 %v2673_v0 }
 0x3f6   :  { %2352 = vmatprep.subr.bf16.mxu0 %v2673_v0  ;;  %2160 = vmatprep.mubr.msk.f32.mxu1 %vm2675_vm4, %v2676_v18 }
 0x3f7   :  { %2149 = vmatprep.mubr.msk.f32.mxu0 %vm2675_vm4, %v2676_v18 }
 0x3f8   :  { %2366 = vmatpush3.bf16.msra.mxu1 %v2848_v41 }
 0x3f9   :  { %2354 = vmatpush3.bf16.msra.mxu0 %v2904_v13  ;;  %2379 = vmatprep.subr.bf16.mxu1 %v2673_v0 }
 0x3fa   :  { %2355 = vmatprep.subr.bf16.mxu0 %v2673_v0 }
 0x3fd   :  { %2357 = vmatpush3.bf16.msra.mxu0 %v2914_v16 }
 0x3fe   :  { %2358 = vmatprep.subr.bf16.mxu0 %v2673_v0 }
 0x401   :  { %2360 = vmatpush3.bf16.msra.mxu0 %v2925_v21 }
 0x402   :  { %2367 = vmatprep.subr.bf16.mxu0 %v2673_v0 }
 0x4c6   :  { %v660_v27 = vpop.f32.mrb[2].mxu1 }
 0x4c7   :  { %v2458_v28 = vadd.f32 %v2881_v57, %v660_v27  ;;  %v566_v29 = vpop.f32.mrb[8].mxu0  ;;  %v2132_v30 = vpop.f32.mrb[3].mxu1 }
 0x4c8   :  { %v567_v32 = vadd.f32 %v2953_v26, %v566_v29  ;;  %v2121_v33 = vpop.f32.mrb[9].mxu0 }
 0x4c9   :  { %2496 = vtanh.f32 %v2458_v28  ;;  %v665_v36 = vmul.f32 0.5, %v2458_v28 }
 0x4ca   :  { %2498 = vtanh.f32 %v567_v32  ;;  %v570_v37 = vmul.f32 0.5, %v567_v32 }
 0x4cb   :  { %2500 = vtanh.f32 %v665_v36 }
 0x4cc   :  { %2502 = vtanh.f32 %v570_v37 }
 0x4d3   :  { %v2497_v34 = vpop.eup %2496 }
 0x4d4   :  { %v2499_v35 = vpop.eup %2498  ;;  %672 = vrot.lane.b32.xlu1 %v2497_v34, %s2677_s8 }
 0x4d5   :  { %577 = vrot.lane.b32.xlu0 %v2499_v35, %s2677_s8  ;;  %v2501_v38 = vpop.eup %2500 }
 0x4d6   :  { %v2503_v39 = vpop.eup %2502  ;;  %v667_v40 = vmul.f32 0.5, %v2501_v38 }
 0x4d7   :  { %v572_v42 = vmul.f32 0.5, %v2503_v39 }
 0x4d8   :  { %v668_v43 = vadd.f32 0.5, %v667_v40 }
 0x4d9   :  { %v573_v45 = vadd.f32 0.5, %v572_v42 }
 0x4da   :  { %v670_v49 = vmul.f32 %v668_v43, %v2886_v7 }
 0x4db   :  { %v575_v51 = vmul.f32 0.0, %v573_v45 }
 0x546   :  { %v673_v44 = vpop.permute.xlu1 %672 }
 0x547   :  { %v675_v46 = vmul.f32 %v673_v44, %v668_v43  ;;  %v578_v47 = vpop.permute.xlu0 %577 }
 0x548   :  { %v580_v48 = vmul.f32 %v578_v47, %v573_v45 }
 0x549   :  { %677 = vrot.lane.b32.xlu1 %v675_v46, %s2678_s25 }
 0x54a   :  { %582 = vrot.lane.b32.xlu0 %v580_v48, %s2678_s25 }
 0x5bb   :  { %v678_v50 = vpop.permute.xlu1 %677 }
 0x5bc   :  { %v680_v52 = vadd.f32 %v678_v50, %v670_v49  ;;  %v583_v53 = vpop.permute.xlu0 %582 }
 0x5bd   :  { %v2962_v54 = vadd.f32 %v583_v53, %v575_v51 }
 0x5be   :  { %2504 = vtanh.f32 %v680_v52 }
 0x5bf   :  { %2506 = vtanh.f32 %v2962_v54 }
 0x5c8   :  { %v2505_v55 = vpop.eup %2504 }
 0x5c9   :  { %v2507_v56 = vpop.eup %2506  ;;  %683 = vrot.lane.b32.xlu1 %v2505_v55, %s2677_s8 }
 0x5ca   :  { %588 = vrot.lane.b32.xlu0 %v2507_v56, %s2677_s8 }
 0x63b   :  { %v684_v58 = vpop.permute.xlu1 %683 }
 0x63c   :  { %v686_v59 = vmul.f32 %v684_v58, %v668_v43  ;;  %v589_v60 = vpop.permute.xlu0 %588 }
 0x63d   :  { %v591_v61 = vmul.f32 %v589_v60, %v573_v45 }
 0x63e   :  { %688 = vrot.lane.b32.xlu0 %v686_v59, %s2678_s25 }
 0x63f   :  { %692 = vrot.lane.b32.xlu1 %v591_v61, %s2677_s8 }
 0x6b0   :  { %v689_v62 = vpop.permute.xlu0 %688 }
 0x6b1   :  { %2161 = vmatmul.mubr.msk.f32.vlgmr.msra.gmra.mrb[4].mxu1 %vm254_vm5, %v689_v62  ;;  %v693_v63 = vpop.permute.xlu1 %692 }
 0x6b2   :  { %v695_v1 = vsel %vm254_vm5, %v689_v62, %v693_v63  ;;  %2381 = vmatpush3.bf16.msra.mxu1 %v2842_v31  ;;  %2190 = vmatprep.mubr.msk.f32.mxu1 %vm2675_vm4, %v2676_v18 }
 0x6b3   :  { %2150 = vmatmul.mubr.msk.f32.vlgmr.msra.gmra.mrb[10].mxu0 %vm496_vm6, %v695_v1  ;;  %2382 = vmatprep.subr.bf16.mxu1 %v2673_v0 }
 0x6b4   :  { %2369 = vmatpush3.bf16.msra.mxu0 %v2898_v11  ;;  %2179 = vmatprep.mubr.msk.f32.mxu0 %vm2675_vm4, %v2676_v18 }
 0x6b5   :  { %2370 = vmatprep.subr.bf16.mxu0 %v2673_v0 }
 0x6b6   :  { %2384 = vmatpush3.bf16.msra.mxu1 %v2848_v41 }
 0x6b7   :  { %2397 = vmatprep.subr.bf16.mxu1 %v2673_v0 }
 0x6b8   :  { %2372 = vmatpush3.bf16.msra.mxu0 %v2904_v13 }
 0x6b9   :  { %2373 = vmatprep.subr.bf16.mxu0 %v2673_v0 }
 0x6bc   :  { %2375 = vmatpush3.bf16.msra.mxu0 %v2914_v16 }
 0x6bd   :  { %2376 = vmatprep.subr.bf16.mxu0 %v2673_v0 }
 0x6c0   :  { %2378 = vmatpush3.bf16.msra.mxu0 %v2925_v21 }
 0x6c1   :  { %2385 = vmatprep.subr.bf16.mxu0 %v2673_v0 }
 0x784   :  { %v859_v2 = vpop.f32.mrb[4].mxu1 }
 0x785   :  { %v2459_v3 = vadd.f32 %v2881_v57, %v859_v2  ;;  %v2162_v4 = vpop.f32.mrb[5].mxu1 }
 0x786   :  { %v765_v5 = vpop.f32.mrb[10].mxu0 }
 0x787   :  { %2508 = vtanh.f32 %v2459_v3  ;;  %v766_v6 = vadd.f32 %v2953_v26, %v765_v5  ;;  %v2151_v7 = vpop.f32.mrb[11].mxu0  ;;  %v864_v10 = vmul.f32 0.5, %v2459_v3 }
 0x789   :  { %2510 = vtanh.f32 %v766_v6  ;;  %v769_v12 = vmul.f32 0.5, %v766_v6 }
 0x78a   :  { %2512 = vtanh.f32 %v864_v10 }
 0x78b   :  { %2514 = vtanh.f32 %v769_v12 }
 0x791   :  { %v2509_v8 = vpop.eup %2508 }
 0x792   :  { %871 = vrot.lane.b32.xlu1 %v2509_v8, %s2677_s8 }
 0x793   :  { %v2511_v9 = vpop.eup %2510 }
 0x794   :  { %776 = vrot.lane.b32.xlu0 %v2511_v9, %s2677_s8  ;;  %v2513_v14 = vpop.eup %2512 }
 0x795   :  { %v2515_v15 = vpop.eup %2514  ;;  %v866_v17 = vmul.f32 0.5, %v2513_v14 }
 0x796   :  { %v771_v19 = vmul.f32 0.5, %v2515_v15 }
 0x797   :  { %v867_v20 = vadd.f32 0.5, %v866_v17 }
 0x798   :  { %v772_v24 = vadd.f32 0.5, %v771_v19 }
 0x799   :  { %v869_v28 = vmul.f32 %v867_v20, %v680_v52 }
 0x79a   :  { %v774_v32 = vmul.f32 %v772_v24, %v2962_v54 }
 0x804   :  { %v872_v22 = vpop.permute.xlu1 %871 }
 0x805   :  { %v874_v23 = vmul.f32 %v872_v22, %v867_v20 }
 0x806   :  { %v777_v25 = vpop.permute.xlu0 %776 }
 0x807   :  { %876 = vrot.lane.b32.xlu1 %v874_v23, %s2678_s25  ;;  %v779_v27 = vmul.f32 %v777_v25, %v772_v24 }
 0x809   :  { %781 = vrot.lane.b32.xlu0 %v779_v27, %s2678_s25 }
 0x879   :  { %v877_v29 = vpop.permute.xlu1 %876 }
 0x87a   :  { %v2994_v30 = vadd.f32 %v877_v29, %v869_v28 }
 0x87b   :  { %v782_v33 = vpop.permute.xlu0 %781 }
 0x87c   :  { %2516 = vtanh.f32 %v2994_v30  ;;  %v2998_v34 = vadd.f32 %v782_v33, %v774_v32 }
 0x87e   :  { %2518 = vtanh.f32 %v2998_v34 }
 0x886   :  { %v2517_v35 = vpop.eup %2516 }
 0x887   :  { %882 = vrot.lane.b32.xlu1 %v2517_v35, %s2677_s8 }
 0x888   :  { %v2519_v36 = vpop.eup %2518 }
 0x889   :  { %787 = vrot.lane.b32.xlu0 %v2519_v36, %s2677_s8 }
 0x8f9   :  { %v883_v37 = vpop.permute.xlu1 %882 }
 0x8fa   :  { %v885_v38 = vmul.f32 %v883_v37, %v867_v20 }
 0x8fb   :  { %v788_v39 = vpop.permute.xlu0 %787 }
 0x8fc   :  { %887 = vrot.lane.b32.xlu0 %v885_v38, %s2678_s25  ;;  %v790_v40 = vmul.f32 %v788_v39, %v772_v24 }
 0x8fe   :  { %891 = vrot.lane.b32.xlu1 %v790_v40, %s2677_s8 }
 0x96e   :  { %v888_v42 = vpop.permute.xlu0 %887 }
 0x96f   :  { %2191 = vmatmul.mubr.msk.f32.vlgmr.msra.gmra.mrb[6].mxu1 %vm254_vm5, %v888_v42 }
 0x970   :  { %2399 = vmatpush3.bf16.msra.mxu1 %v2842_v31  ;;  %2220 = vmatprep.mubr.msk.f32.mxu1 %vm2675_vm4, %v2676_v18  ;;  %v892_v43 = vpop.permute.xlu1 %891 }
 0x971   :  { %2400 = vmatprep.subr.bf16.mxu1 %v2673_v0  ;;  %v894_v44 = vsel %vm254_vm5, %v888_v42, %v892_v43 }
 0x972   :  { %2180 = vmatmul.mubr.msk.f32.vlgmr.msra.gmra.mrb[12].mxu0 %vm496_vm6, %v894_v44 }
 0x973   :  { %2387 = vmatpush3.bf16.msra.mxu0 %v2898_v11  ;;  %2209 = vmatprep.mubr.msk.f32.mxu0 %vm2675_vm4, %v2676_v18 }
 0x974   :  { %2402 = vmatpush3.bf16.msra.mxu1 %v2848_v41  ;;  %2388 = vmatprep.subr.bf16.mxu0 %v2673_v0 }
 0x975   :  { %2415 = vmatprep.subr.bf16.mxu1 %v2673_v0 }
 0x977   :  { %2390 = vmatpush3.bf16.msra.mxu0 %v2904_v13 }
 0x978   :  { %2391 = vmatprep.subr.bf16.mxu0 %v2673_v0 }
 0x97b   :  { %2393 = vmatpush3.bf16.msra.mxu0 %v2914_v16 }
 0x97c   :  { %2394 = vmatprep.subr.bf16.mxu0 %v2673_v0 }
 0x97f   :  { %2396 = vmatpush3.bf16.msra.mxu0 %v2925_v21 }
 0x980   :  { %2403 = vmatprep.subr.bf16.mxu0 %v2673_v0 }
 0xa42   :  { %v1058_v45 = vpop.f32.mrb[6].mxu1 }
 0xa43   :  { %v2460_v46 = vadd.f32 %v2881_v57, %v1058_v45  ;;  %v2192_v47 = vpop.f32.mrb[7].mxu1 }
 0xa45   :  { %2520 = vtanh.f32 %v2460_v46  ;;  %v964_v48 = vpop.f32.mrb[12].mxu0  ;;  %v1063_v53 = vmul.f32 0.5, %v2460_v46 }
 0xa46   :  { %v965_v49 = vadd.f32 %v2953_v26, %v964_v48  ;;  %v2181_v50 = vpop.f32.mrb[13].mxu0 }
 0xa48   :  { %2522 = vtanh.f32 %v965_v49  ;;  %v968_v54 = vmul.f32 0.5, %v965_v49 }
 0xa49   :  { %2524 = vtanh.f32 %v1063_v53 }
 0xa4a   :  { %2526 = vtanh.f32 %v968_v54 }
 0xa4f   :  { %v2521_v51 = vpop.eup %2520 }
 0xa50   :  { %1070 = vrot.lane.b32.xlu1 %v2521_v51, %s2677_s8 }
 0xa52   :  { %v2523_v52 = vpop.eup %2522 }
 0xa53   :  { %975 = vrot.lane.b32.xlu0 %v2523_v52, %s2677_s8  ;;  %v2525_v55 = vpop.eup %2524 }
 0xa54   :  { %v1065_v56 = vmul.f32 0.5, %v2525_v55  ;;  %v2527_v58 = vpop.eup %2526 }
 0xa55   :  { %v970_v60 = vmul.f32 0.5, %v2527_v58 }
 0xa56   :  { %v1066_v59 = vadd.f32 0.5, %v1065_v56 }
 0xa57   :  { %v971_v63 = vadd.f32 0.5, %v970_v60 }
 0xa58   :  { %v1068_v3 = vmul.f32 %v1066_v59, %v2994_v30 }
 0xa59   :  { %v973_v6 = vmul.f32 %v971_v63, %v2998_v34 }
 0xac2   :  { %v1071_v61 = vpop.permute.xlu1 %1070 }
 0xac3   :  { %v1073_v62 = vmul.f32 %v1071_v61, %v1066_v59 }
 0xac5   :  { %1075 = vrot.lane.b32.xlu1 %v1073_v62, %s2678_s25  ;;  %v976_v1 = vpop.permute.xlu0 %975 }
 0xac6   :  { %v978_v2 = vmul.f32 %v976_v1, %v971_v63 }
 0xac8   :  { %980 = vrot.lane.b32.xlu0 %v978_v2, %s2678_s25 }
 0xb37   :  { %v1076_v4 = vpop.permute.xlu1 %1075 }
 0xb38   :  { %v3031_v5 = vadd.f32 %v1076_v4, %v1068_v3 }
 0xb3a   :  { %2528 = vtanh.f32 %v3031_v5  ;;  %v981_v7 = vpop.permute.xlu0 %980 }
 0xb3b   :  { %v3035_v8 = vadd.f32 %v981_v7, %v973_v6 }
 0xb3d   :  { %2530 = vtanh.f32 %v3035_v8 }
 0xb44   :  { %v2529_v9 = vpop.eup %2528 }
 0xb45   :  { %1081 = vrot.lane.b32.xlu1 %v2529_v9, %s2677_s8 }
 0xb47   :  { %v2531_v10 = vpop.eup %2530 }
 0xb48   :  { %986 = vrot.lane.b32.xlu0 %v2531_v10, %s2677_s8 }
 0xbb7   :  { %v1082_v12 = vpop.permute.xlu1 %1081 }
 0xbb8   :  { %v1084_v14 = vmul.f32 %v1082_v12, %v1066_v59 }
 0xbba   :  { %1086 = vrot.lane.b32.xlu0 %v1084_v14, %s2678_s25  ;;  %v987_v15 = vpop.permute.xlu0 %986 }
 0xbbb   :  { %v989_v17 = vmul.f32 %v987_v15, %v971_v63 }
 0xbbd   :  { %1090 = vrot.lane.b32.xlu1 %v989_v17, %s2677_s8 }
 0xc2c   :  { %v1087_v19 = vpop.permute.xlu0 %1086 }
 0xc2d   :  { %2221 = vmatmul.mubr.msk.f32.vlgmr.msra.gmra.mrb[8].mxu1 %vm254_vm5, %v1087_v19 }
 0xc2e   :  { %2417 = vmatpush3.bf16.msra.mxu1 %v2842_v31  ;;  %2250 = vmatprep.mubr.msk.f32.mxu1 %vm2675_vm4, %v2676_v18 }
 0xc2f   :  { %2418 = vmatprep.subr.bf16.mxu1 %v2673_v0  ;;  %v1091_v20 = vpop.permute.xlu1 %1090 }
 0xc30   :  { %v1093_v22 = vsel %vm254_vm5, %v1087_v19, %v1091_v20 }
 0xc31   :  { %2210 = vmatmul.mubr.msk.f32.vlgmr.msra.gmra.mrb[14].mxu0 %vm496_vm6, %v1093_v22 }
 0xc32   :  { %2420 = vmatpush3.bf16.msra.mxu1 %v2848_v41  ;;  %2405 = vmatpush3.bf16.msra.mxu0 %v2898_v11 }
 0xc33   :  { %2239 = vmatprep.mubr.msk.f32.mxu0 %vm2675_vm4, %v2676_v18  ;;  %2406 = vmatprep.subr.bf16.mxu0 %v2673_v0 }
 0xc34   :  { %2421 = vmatprep.subr.bf16.mxu1 %v2673_v0 }
 0xc36   :  { %2408 = vmatpush3.bf16.msra.mxu0 %v2904_v13 }
 0xc37   :  { %2409 = vmatprep.subr.bf16.mxu0 %v2673_v0 }
 0xc3a   :  { %2411 = vmatpush3.bf16.msra.mxu0 %v2914_v16 }
 0xc3b   :  { %2412 = vmatprep.subr.bf16.mxu0 %v2673_v0 }
 0xc3e   :  { %2414 = vmatpush3.bf16.msra.mxu0 %v2925_v21 }
 0xc3f   :  { %2439 = vmatprep.subr.bf16.mxu0 %v2673_v0 }
 0xd00   :  { %v1257_v23 = vpop.f32.mrb[8].mxu1 }
 0xd01   :  { %v2461_v24 = vadd.f32 %v2881_v57, %v1257_v23  ;;  %v2222_v25 = vpop.f32.mrb[9].mxu1 }
 0xd03   :  { %2532 = vtanh.f32 %v2461_v24  ;;  %v1262_v33 = vmul.f32 0.5, %v2461_v24 }
 0xd04   :  { %v1163_v27 = vpop.f32.mrb[14].mxu0 }
 0xd05   :  { %v1164_v28 = vadd.f32 %v2953_v26, %v1163_v27  ;;  %v2211_v29 = vpop.f32.mrb[15].mxu0 }
 0xd07   :  { %2534 = vtanh.f32 %v1164_v28  ;;  %v1167_v34 = vmul.f32 0.5, %v1164_v28 }
 0xd08   :  { %2536 = vtanh.f32 %v1262_v33 }
 0xd09   :  { %2538 = vtanh.f32 %v1167_v34 }
 0xd0d   :  { %v2533_v30 = vpop.eup %2532 }
 0xd0e   :  { %1269 = vrot.lane.b32.xlu1 %v2533_v30, %s2677_s8 }
 0xd11   :  { %v2535_v32 = vpop.eup %2534 }
 0xd12   :  { %1174 = vrot.lane.b32.xlu0 %v2535_v32, %s2677_s8  ;;  %v2537_v35 = vpop.eup %2536 }
 0xd13   :  { %v1264_v36 = vmul.f32 0.5, %v2537_v35  ;;  %v2539_v37 = vpop.eup %2538 }
 0xd14   :  { %v1169_v40 = vmul.f32 0.5, %v2539_v37 }
 0xd15   :  { %v1265_v38 = vadd.f32 0.5, %v1264_v36 }
 0xd16   :  { %v1170_v43 = vadd.f32 0.5, %v1169_v40 }
 0xd17   :  { %v1267_v46 = vmul.f32 %v1265_v38, %v3031_v5 }
 0xd18   :  { %v1172_v49 = vmul.f32 %v1170_v43, %v3035_v8 }
 0xd80   :  { %v1270_v39 = vpop.permute.xlu1 %1269 }
 0xd81   :  { %v1272_v42 = vmul.f32 %v1270_v39, %v1265_v38 }
 0xd83   :  { %1274 = vrot.lane.b32.xlu1 %v1272_v42, %s2678_s25 }
 0xd84   :  { %v1175_v44 = vpop.permute.xlu0 %1174 }
 0xd85   :  { %v1177_v45 = vmul.f32 %v1175_v44, %v1170_v43 }
 0xd87   :  { %1179 = vrot.lane.b32.xlu0 %v1177_v45, %s2678_s25 }
 0xdf5   :  { %v1275_v47 = vpop.permute.xlu1 %1274 }
 0xdf6   :  { %v3068_v48 = vadd.f32 %v1275_v47, %v1267_v46 }
 0xdf8   :  { %2540 = vtanh.f32 %v3068_v48 }
 0xdf9   :  { %v1180_v50 = vpop.permute.xlu0 %1179 }
 0xdfa   :  { %v3072_v51 = vadd.f32 %v1180_v50, %v1172_v49 }
 0xdfc   :  { %2542 = vtanh.f32 %v3072_v51 }
 0xe02   :  { %v2541_v52 = vpop.eup %2540 }
 0xe03   :  { %1280 = vrot.lane.b32.xlu1 %v2541_v52, %s2677_s8 }
 0xe06   :  { %v2543_v53 = vpop.eup %2542 }
 0xe07   :  { %1185 = vrot.lane.b32.xlu0 %v2543_v53, %s2677_s8 }
 0xe75   :  { %v1281_v54 = vpop.permute.xlu1 %1280 }
 0xe76   :  { %v1283_v55 = vmul.f32 %v1281_v54, %v1265_v38 }
 0xe78   :  { %1285 = vrot.lane.b32.xlu0 %v1283_v55, %s2678_s25 }
 0xe79   :  { %v1186_v56 = vpop.permute.xlu0 %1185 }
 0xe7a   :  { %v1188_v58 = vmul.f32 %v1186_v56, %v1170_v43 }
 0xe7c   :  { %1289 = vrot.lane.b32.xlu1 %v1188_v58, %s2677_s8 }
 0xeea   :  { %v1286_v59 = vpop.permute.xlu0 %1285 }
 0xeeb   :  { %2251 = vmatmul.mubr.msk.f32.vlgmr.msra.gmra.mrb[10].mxu1 %vm254_vm5, %v1286_v59 }
 0xeec   :  { %2423 = vmatpush3.bf16.msra.mxu1 %v2898_v11  ;;  %2269 = vmatprep.mubr.msk.f32.mxu1 %vm2675_vm4, %v2676_v18 }
 0xeed   :  { %2424 = vmatprep.subr.bf16.mxu1 %v2673_v0 }
 0xeee   :  { %v1290_v60 = vpop.permute.xlu1 %1289 }
 0xeef   :  { %v1292_v61 = vsel %vm254_vm5, %v1286_v59, %v1290_v60 }
 0xef0   :  { %2426 = vmatpush3.bf16.msra.mxu1 %v2904_v13  ;;  %2240 = vmatmul.mubr.msk.f32.vlgmr.msra.gmra.mrb[16].mxu0 %vm496_vm6, %v1292_v61 }
 0xef1   :  { %2427 = vmatprep.subr.bf16.mxu1 %v2673_v0  ;;  %2441 = vmatpush3.bf16.msra.mxu0 %v2898_v11 }
 0xef2   :  { %2299 = vmatprep.mubr.msk.f32.mxu0 %vm2675_vm4, %v2676_v18  ;;  %2442 = vmatprep.subr.bf16.mxu0 %v2673_v0 }
 0xef4   :  { %2429 = vmatpush3.bf16.msra.mxu1 %v2914_v16 }
 0xef5   :  { %2430 = vmatprep.subr.bf16.mxu1 %v2673_v0  ;;  %2444 = vmatpush3.bf16.msra.mxu0 %v2904_v13 }
 0xef6   :  { %2445 = vmatprep.subr.bf16.mxu0 %v2673_v0 }
 0xef8   :  { %2432 = vmatpush3.bf16.msra.mxu1 %v2925_v21 }
 0xef9   :  { %2433 = vmatprep.subr.bf16.mxu1 %v2673_v0  ;;  %2447 = vmatpush3.bf16.msra.mxu0 %v2914_v16 }
 0xefa   :  { %2448 = vmatprep.subr.bf16.mxu0 %v2673_v0 }
 0xefd   :  { %2450 = vmatpush3.bf16.msra.mxu0 %v2925_v21 }
 0xefe   :  { %2451 = vmatprep.subr.bf16.mxu0 %v2673_v0 }
 0xfbe   :  { %v1456_v11 = vpop.f32.mrb[10].mxu1 }
 0xfbf   :  { %v2462_v62 = vadd.f32 %v2881_v57, %v1456_v11  ;;  %v2252_v63 = vpop.f32.mrb[11].mxu1 }
 0xfc1   :  { %2544 = vtanh.f32 %v2462_v62  ;;  %v1461_v4 = vmul.f32 0.5, %v2462_v62 }
 0xfc3   :  { %v1362_v13 = vpop.f32.mrb[16].mxu0 }
 0xfc4   :  { %v1363_v1 = vadd.f32 %v2953_v26, %v1362_v13  ;;  %v2241_v2 = vpop.f32.mrb[17].mxu0 }
 0xfc6   :  { %2546 = vtanh.f32 %v1363_v1  ;;  %v1366_v21 = vmul.f32 0.5, %v1363_v1 }
 0xfc7   :  { %2548 = vtanh.f32 %v1461_v4 }
 0xfc8   :  { %2550 = vtanh.f32 %v1366_v21 }
 0xfcb   :  { %v2545_v3 = vpop.eup %2544 }
 0xfcc   :  { %1468 = vrot.lane.b32.xlu1 %v2545_v3, %s2677_s8 }
 0xfd0   :  { %v2547_v16 = vpop.eup %2546 }
 0xfd1   :  { %1373 = vrot.lane.b32.xlu0 %v2547_v16, %s2677_s8  ;;  %v2549_v5 = vpop.eup %2548 }
 0xfd2   :  { %v1463_v6 = vmul.f32 0.5, %v2549_v5  ;;  %v2551_v7 = vpop.eup %2550 }
 0xfd3   :  { %v1368_v12 = vmul.f32 0.5, %v2551_v7 }
 0xfd4   :  { %v1464_v8 = vadd.f32 0.5, %v1463_v6 }
 0xfd5   :  { %v1369_v14 = vadd.f32 0.5, %v1368_v12 }
 0xfd6   :  { %v1466_v19 = vmul.f32 %v1464_v8, %v3068_v48 }
 0xfd7   :  { %v1371_v23 = vmul.f32 %v1369_v14, %v3072_v51 }
0x103e   :  { %v1469_v9 = vpop.permute.xlu1 %1468 }
0x103f   :  { %v1471_v10 = vmul.f32 %v1469_v9, %v1464_v8 }
0x1041   :  { %1473 = vrot.lane.b32.xlu1 %v1471_v10, %s2678_s25 }
0x1043   :  { %v1374_v15 = vpop.permute.xlu0 %1373 }
0x1044   :  { %v1376_v17 = vmul.f32 %v1374_v15, %v1369_v14 }
0x1046   :  { %1378 = vrot.lane.b32.xlu0 %v1376_v17, %s2678_s25 }
0x10b3   :  { %v1474_v20 = vpop.permute.xlu1 %1473 }
0x10b4   :  { %v1476_v22 = vadd.f32 %v1474_v20, %v1466_v19  ;;  %v1786_v20 = vld [vmem:[#allocation7] sm:$0xff] }
0x10b6   :  { %2552 = vtanh.f32 %v1476_v22 }
0x10b8   :  { %v1379_v24 = vpop.permute.xlu0 %1378 }
0x10b9   :  { %v1381_v25 = vadd.f32 %v1379_v24, %v1371_v23  ;;  %v1789_v24 = vld [vmem:[#allocation7 + $0x18] sm:$0xff] }
0x10bb   :  { %2554 = vtanh.f32 %v1381_v25 }
0x10c0   :  { %v2553_v27 = vpop.eup %2552 }
0x10c1   :  { %1479 = vrot.lane.b32.xlu1 %v2553_v27, %s2677_s8 }
0x10c5   :  { %v2555_v28 = vpop.eup %2554 }
0x10c6   :  { %1384 = vrot.lane.b32.xlu0 %v2555_v28, %s2677_s8 }
0x1133   :  { %v1480_v29 = vpop.permute.xlu1 %1479 }
0x1134   :  { %v1482_v30 = vmul.f32 %v1480_v29, %v1464_v8 }
0x1136   :  { %1484 = vrot.lane.b32.xlu0 %v1482_v30, %s2678_s25 }
0x1138   :  { %v1385_v32 = vpop.permute.xlu0 %1384 }
0x1139   :  { %v1387_v33 = vmul.f32 %v1385_v32, %v1369_v14  ;;  %v1921_v32 = vld [vmem:[%s3167_s9] ss:$0 sm:$0xff] }
0x113b   :  { %1488 = vrot.lane.b32.xlu1 %v1387_v33, %s2677_s8 }
0x11a8   :  { %v1485_v34 = vpop.permute.xlu0 %1484 }
0x11ad   :  { %v1489_v35 = vpop.permute.xlu1 %1488 }
0x11ae   :  { %v1491_v36 = vsel %vm254_vm5, %v1485_v34, %v1489_v35 }
0x11af   :  { %2270 = vmatmul.mubr.msk.f32.vlgmr.msra.gmra.mrb[14].mxu1 %vm496_vm6, %v1491_v36 }
0x11b0   :  { %2435 = vmatpush3.bf16.msra.mxu1 %v2842_v31  ;;  %2280 = vmatprep.mubr.msk.f32.mxu1 %vm2675_vm4, %v2676_v18 }
0x11b1   :  { %2436 = vmatprep.subr.bf16.mxu1 %v2673_v0 }
0x11b4   :  { %2438 = vmatpush3.bf16.msra.mxu1 %v2848_v41 }
0x11b7   :  { %2281 = vmatmul.mubr.msk.f32.vlgmr.msra.gmra.mrb[12].mxu1 %vm254_vm5, %v1485_v34 }
0x1282   :  { %v1561_v37 = vpop.f32.mrb[14].mxu1 }
0x1283   :  { %v1562_v38 = vadd.f32 %v2953_v26, %v1561_v37  ;;  %v2271_v39 = vpop.f32.mrb[15].mxu1 }
0x1285   :  { %2556 = vtanh.f32 %v1562_v38  ;;  %v1565_v45 = vmul.f32 0.5, %v1562_v38 }
0x128a   :  { %v1655_v40 = vpop.f32.mrb[12].mxu1 }
0x128b   :  { %v2463_v42 = vadd.f32 %v2881_v57, %v1655_v40  ;;  %v2282_v43 = vpop.f32.mrb[13].mxu1 }
0x128d   :  { %2558 = vtanh.f32 %v2463_v42  ;;  %v1660_v41 = vmul.f32 0.5, %v2463_v42 }
0x128e   :  { %2560 = vtanh.f32 %v1565_v45 }
0x128f   :  { %v2557_v31 = vpop.eup %2556  ;;  %2562 = vtanh.f32 %v1660_v41 }
0x1290   :  { %1572 = vrot.lane.b32.xlu0 %v2557_v31, %s2677_s8 }
0x1297   :  { %v2559_v44 = vpop.eup %2558 }
0x1298   :  { %1667 = vrot.lane.b32.xlu1 %v2559_v44, %s2677_s8  ;;  %v2561_v46 = vpop.eup %2560 }
0x1299   :  { %v1567_v47 = vmul.f32 0.5, %v2561_v46  ;;  %v2563_v49 = vpop.eup %2562 }
0x129a   :  { %v1662_v57 = vmul.f32 0.5, %v2563_v49 }
0x129b   :  { %v1568_v48 = vadd.f32 0.5, %v1567_v47 }
0x129c   :  { %v1663_v52 = vadd.f32 0.5, %v1662_v57 }
0x129d   :  { %v1570_v55 = vmul.f32 %v1568_v48, %v1381_v25 }
0x129e   :  { %v1665_v59 = vmul.f32 %v1663_v52, %v1476_v22  ;;  %v1788_v22 = vld [vmem:[#allocation7 + $0x10] sm:$0xff] }
0x129f   :  { %v2455_v25 = vpack.c.bf16 %v1789_v24, %v1788_v22 }
0x1302   :  { %v1573_v50 = vpop.permute.xlu0 %1572 }
0x1303   :  { %v1575_v51 = vmul.f32 %v1573_v50, %v1568_v48 }
0x1305   :  { %1577 = vrot.lane.b32.xlu0 %v1575_v51, %s2678_s25 }
0x130a   :  { %v1668_v53 = vpop.permute.xlu1 %1667 }
0x130b   :  { %v1670_v54 = vmul.f32 %v1668_v53, %v1663_v52 }
0x130d   :  { %1672 = vrot.lane.b32.xlu1 %v1670_v54, %s2678_s25 }
0x1377   :  { %v1578_v56 = vpop.permute.xlu0 %1577 }
0x1378   :  { %v1580_v58 = vadd.f32 %v1578_v56, %v1570_v55 }
0x137a   :  { %2564 = vtanh.f32 %v1580_v58 }
0x137f   :  { %v1673_v60 = vpop.permute.xlu1 %1672 }
0x1380   :  { %v1675_v61 = vadd.f32 %v1673_v60, %v1665_v59 }
0x1382   :  { %2566 = vtanh.f32 %v1675_v61 }
0x1384   :  { %v2565_v11 = vpop.eup %2564 }
0x1385   :  { %1583 = vrot.lane.b32.xlu0 %v2565_v11, %s2677_s8 }
0x138c   :  { %v2567_v62 = vpop.eup %2566 }
0x138d   :  { %1678 = vrot.lane.b32.xlu1 %v2567_v62, %s2677_s8 }
0x13f7   :  { %v1584_v63 = vpop.permute.xlu0 %1583 }
0x13f8   :  { %v1586_v13 = vmul.f32 %v1584_v63, %v1568_v48 }
0x13fa   :  { %1687 = vrot.lane.b32.xlu1 %v1586_v13, %s2677_s8 }
0x13ff   :  { %v1679_v1 = vpop.permute.xlu1 %1678 }
0x1400   :  { %v1681_v2 = vmul.f32 %v1679_v1, %v1663_v52 }
0x1402   :  { %1683 = vrot.lane.b32.xlu0 %v1681_v2, %s2678_s25 }
0x146c   :  { %v1688_v3 = vpop.permute.xlu1 %1687 }
0x1474   :  { %v1684_v16 = vpop.permute.xlu0 %1683 }
0x1475   :  { %v1690_v4 = vsel %vm254_vm5, %v1684_v16, %v1688_v3 }
0x1476   :  { %2300 = vmatmul.mubr.msk.f32.vlgmr.msra.gmra.mrb[18].mxu0 %vm496_vm6, %v1690_v4 }
0x1477   :  { %2310 = vmatprep.mubr.msk.f32.mxu0 %vm2675_vm4, %v2676_v18 }
0x1549   :  { %v1760_v21 = vpop.f32.mrb[18].mxu0 }
0x154a   :  { %v1761_v5 = vadd.f32 %v2953_v26, %v1760_v21  ;;  %v2301_v6 = vpop.f32.mrb[19].mxu0  ;;  %v1787_v26 = vld [vmem:[#allocation7 + $0x8] sm:$0xff] }
0x154b   :  { %v2452_v23 = vpack.c.bf16 %v1787_v26, %v1786_v20 }
0x154c   :  { %2568 = vtanh.f32 %v1761_v5  ;;  %v1764_v8 = vmul.f32 0.5, %v1761_v5 }
0x154d   :  { %2453 = vmatpush3.bf16.msra.mxu0 %v2452_v23 }
0x154e   :  { %2570 = vtanh.f32 %v1764_v8  ;;  %2454 = vmatprep.subr.bf16.mxu0 %v2673_v0 }
0x1551   :  { %2456 = vmatpush3.bf16.msra.mxu0 %v2455_v25 }
0x1556   :  { %v2569_v7 = vpop.eup %2568 }
0x1557   :  { %1771 = vrot.lane.b32.xlu0 %v2569_v7, %s2677_s8 }
0x1558   :  { %v2571_v9 = vpop.eup %2570 }
0x1559   :  { %v1766_v10 = vmul.f32 0.5, %v2571_v9 }
0x155b   :  { %v1767_v12 = vadd.f32 0.5, %v1766_v10 }
0x155d   :  { %v1769_v17 = vmul.f32 %v1767_v12, %v1580_v58 }
0x15c9   :  { %v1772_v14 = vpop.permute.xlu0 %1771 }
0x15ca   :  { %v1774_v15 = vmul.f32 %v1772_v14, %v1767_v12 }
0x15cc   :  { %1776 = vrot.lane.b32.xlu1 %v1774_v15, %s2678_s25 }
0x163e   :  { %v1777_v19 = vpop.permute.xlu1 %1776 }
0x163f   :  { %v1779_v18 = vadd.f32 %v1777_v19, %v1769_v17 }
0x1641   :  { %2572 = vtanh.f32 %v1779_v18 }
0x164b   :  { %v2573_v27 = vpop.eup %2572 }
0x164c   :  { %1782 = vrot.lane.b32.xlu0 %v2573_v27, %s2677_s8 }
0x16be   :  { %v1783_v28 = vpop.permute.xlu0 %1782 }
0x16bf   :  { %v1785_v29 = vmul.f32 %v1783_v28, %v1767_v12 }
0x16c1   :  { %1798 = vrot.lane.b32.xlu1 %v1785_v29, %s2678_s25 }
0x1733   :  { %v1799_v30 = vpop.permute.xlu1 %1798 }
0x1734   :  { %2311 = vmatmul.mubr.msk.f32.vlgmr.msra.gmra.mrb[20].mxu0 %vm254_vm5, %v1799_v30 }
0x1807   :  { %v1868_v33 = vpop.f32.mrb[20].mxu0 }
0x1808   :  { %v1869_v34 = vadd.f32 %v1921_v32, %v1868_v33  ;;  %v2312_v0 = vpop.f32.mrb[21].mxu0 }
0x180a   :  { %1872 = vst [vmem:[#allocation8] sm:$0xff] %v1869_v34 }
0x180b   :  { %2651 = shalt.err (!%p2648_p0)
}
0x180c   :  { %s2652_s2 = scalar_lea.hbm %s3168_s10, 128 }
0x180d   :  { %p2653_p1 = scmp.ne.s32.totalorder %s3168_s10, %s2652_s2  ;;  %p2656_p2 = scmp.lt.u32.totalorder %s2652_s2, %s3168_s10 }
0x180f   :  { %p2658_p3 = pnand %p2656_p2, %p2653_p1 }
0x1811   :  { %2661 = shalt.err (!%p2658_p3)
}
0x1812   :  { %1882 = dma.vmem_to_hbm [thread:$0]  %s1880_s16, 128, %s3168_s10, [#allocation4]  }
0x1813   :  { %2666 = dma.done.wait [#allocation4], 128  }
0x1814   :  { %2667 = vsyncadd [#allocation4], 4294967168 }
0x1815   :  { %1886 = vsyncpa [#allocation3], 1 }
0x1816   :  { %1887 = vsyncpa [#allocation6], 1 }
0x1817   :  { %1888 = vsyncpa [#allocation4], 1 }

</bundles_post_ra>
